<compile_context>
chip_gen: v6e
topology: v6e:2x2x1
jax: 0.10.0
libtpu: 0.0.40
codegen_flags: <defaults>
</compile_context>

<pallas_src>
import numpy as np

import jax
import jax.numpy as jnp
from jax.experimental import pallas as pl
from jax.experimental.pallas import tpu as pltpu


# ----------------------------------------------------------------------------
# Fused Pallas kernel (one grid step == one batch element)
# ----------------------------------------------------------------------------
def _lenet_fused_kernel(x_ref, t1_ref, s1_ref, sh1_ref, t2_ref, s2_ref, sh2_ref,
                        w1e_ref, b1_ref, w2_ref, b2_ref, w3_ref, b3_ref, o_ref):
    f32 = jnp.float32
    cdt = t1_ref.dtype                        # MXU operand dtype (bfloat16)

    K = t1_ref.shape[0]                       # conv kernel size (5)
    wcol = x_ref.shape[2] // 2                # W * Cin (one row-parity block)
    half1 = t1_ref.shape[2] // 2              # P1 * C1 = 14 * 6
    half2 = t2_ref.shape[2] // 2              # P2 * C2 = 5 * 16
    P2 = w1e_ref.shape[0]                     # 5  (pool2 output size)
    H2 = 2 * P2                               # 10 (conv2 output height)
    P1 = (2 * x_ref.shape[1] - K + 1) // 2    # 14 (pool1 output size)

    # rows = h // 2, cols = (h % 2, w, c)
    xp = x_ref[0]                             # (H/2, 2*W*Cin)

    # ---- conv1 + BN + ReLU + 2x2 max-pool --------------------------------
    # Even/odd conv1 output rows (parity p) are computed separately so the H
    # half of the pool is a plain elementwise max; T1[kh] encodes the
    # W-direction conv with output columns (q, j, co), making the W half of
    # the pool a max of two contiguous lane slices.
    zw1 = []
    for p in range(2):
        acc = jnp.zeros((P1, 2 * half1), f32)
        for kh in range(K):
            s = p + kh                        # input row: h_in = 2*i + s
            a, r = s // 2, s % 2
            xs = xp[a:a + P1, r * wcol:(r + 1) * wcol]           # (P1, W*Cin)
            acc = acc + jnp.dot(xs.astype(cdt), t1_ref[kh],
                                preferred_element_type=f32)
        z = jnp.maximum(acc * s1_ref[...] + sh1_ref[...], 0.0)    # BN + ReLU
        zw1.append(jnp.maximum(z[:, :half1], z[:, half1:]))       # pool (W)
    p1 = jnp.maximum(zw1[0], zw1[1])          # pool (H) -> (P1, P1*C1)

    # ---- conv2 + BN + ReLU + W half of the 2x2 max-pool ------------------
    acc2 = jnp.zeros((H2, t2_ref.shape[2]), f32)
    for kh in range(K):
        acc2 = acc2 + jnp.dot(p1[kh:kh + H2, :].astype(cdt), t2_ref[kh],
                              preferred_element_type=f32)
    z2 = jnp.maximum(acc2 * s2_ref[...] + sh2_ref[...], 0.0)
    zw2 = jnp.maximum(z2[:, :half2], z2[:, half2:])               # (H2, P2*C2)

    # ---- H half of pool2 fused into the fc1 contraction ------------------
    acc3 = jnp.zeros((1, w1e_ref.shape[2]), f32)
    for i2 in range(P2):
        row = jnp.maximum(zw2[2 * i2:2 * i2 + 1, :],
                          zw2[2 * i2 + 1:2 * i2 + 2, :])          # (1, P2*C2)
        acc3 = acc3 + jnp.dot(row.astype(cdt), w1e_ref[i2],
                              preferred_element_type=f32)
    h = jnp.maximum(acc3 + b1_ref[...], 0.0)                      # fc1 + ReLU
    # Dropout(0.3): identity in eval mode.
    h = jnp.maximum(jnp.dot(h.astype(cdt), w2_ref[...],
                            preferred_element_type=f32) + b2_ref[...], 0.0)
    # Dropout(0.3): identity in eval mode.
    logits = jnp.dot(h.astype(cdt), w3_ref[...],
                     preferred_element_type=f32) + b3_ref[...]
    o_ref[0] = logits


# ----------------------------------------------------------------------------
# One-time parameter preparation (outside the jitted forward)
# ----------------------------------------------------------------------------
def prepare_params(params, *, eps=1e-5, compute_dtype=jnp.bfloat16):
    w1 = np.asarray(params["w1"], np.float32)        # (C1, Cin, 5, 5)
    w2 = np.asarray(params["w2"], np.float32)        # (C2, C1, 5, 5)
    C1, Cin, K, _ = w1.shape
    C2 = w2.shape[0]
    H = W = 32                                        # implied by 16*5*5 flatten
    P1 = (H - K + 1) // 2                             # 14
    P2 = (P1 - K + 1) // 2                            # 5

    def toeplitz(w, w_in, pooled_w):
        # t[kh, win*cin + c, q*pooled_w*cout + j*cout + co] = w[co, c, kh, kw]
        # with win = 2*j + q + kw  (conv output col 2*j+q reads input col win)
        cout, cin = w.shape[0], w.shape[1]
        t = np.zeros((K, w_in * cin, 2 * pooled_w * cout), np.float32)
        for kh in range(K):
            for q in range(2):
                for j in range(pooled_w):
                    for kw in range(K):
                        win = 2 * j + q + kw
                        col = q * pooled_w * cout + j * cout
                        t[kh, win * cin:(win + 1) * cin,
                          col:col + cout] = w[:, :, kh, kw].T
        return t

    t1 = toeplitz(w1, W, P1)                          # (5, 32*Cin, 2*14*6)
    t2 = toeplitz(w2, P1, P2)                         # (5, 14*6,   2*5*16)

    def bn_fold(g, be, m, v, bias):
        g, be = np.asarray(g, np.float32), np.asarray(be, np.float32)
        m, v = np.asarray(m, np.float32), np.asarray(v, np.float32)
        bias = np.asarray(bias, np.float32)
        scale = g / np.sqrt(v + eps)
        shift = be - m * scale + bias * scale
        return scale, shift

    s1, sh1 = bn_fold(params["g1"], params["be1"], params["m1"],
                      params["v1"], params["b1"])
    s2, sh2 = bn_fold(params["g2"], params["be2"], params["m2"],
                      params["v2"], params["b2"])

    fw1 = np.asarray(params["fw1"], np.float32)       # (120, C2*P2*P2), flat (c,h,w)
    F1 = fw1.shape[0]
    # Regroup fc1 per pooled row i2 so the H half of pool2 can be fused into
    # the fc1 contraction: w1e[i2, j2*C2 + co, n] == fw1[n, co*25 + i2*5 + j2]
    w1e = fw1.reshape(F1, C2, P2, P2).transpose(2, 3, 1, 0).reshape(P2, P2 * C2, F1)

    f32, cdt = jnp.float32, compute_dtype
    return {
        "t1": jnp.asarray(t1, cdt),
        "s1": jnp.asarray(np.tile(s1, 2 * P1)[None, :], f32),
        "sh1": jnp.asarray(np.tile(sh1, 2 * P1)[None, :], f32),
        "t2": jnp.asarray(t2, cdt),
        "s2": jnp.asarray(np.tile(s2, 2 * P2)[None, :], f32),
        "sh2": jnp.asarray(np.tile(sh2, 2 * P2)[None, :], f32),
        "w1e": jnp.asarray(w1e, cdt),
        "b1": jnp.asarray(np.asarray(params["fb1"], np.float32)[None, :], f32),
        "w2": jnp.asarray(np.asarray(params["fw2"], np.float32).T, cdt),
        "b2": jnp.asarray(np.asarray(params["fb2"], np.float32)[None, :], f32),
        "w3": jnp.asarray(np.asarray(params["fw3"], np.float32).T, cdt),
        "b3": jnp.asarray(np.asarray(params["fb3"], np.float32)[None, :], f32),
    }


# ----------------------------------------------------------------------------
# Jitted forward: one tiny layout prep + ONE fused pallas_call
# ----------------------------------------------------------------------------
def lenet_forward(x_nchw, prep):
    B, Cin, H, W = x_nchw.shape
    cdt = prep["t1"].dtype
    num_classes = prep["w3"].shape[1]

    # NCHW -> NHWC -> split H by parity: rows=(b, h//2), cols=(h%2, w, c).
    xp = jnp.transpose(x_nchw, (0, 2, 3, 1)).astype(cdt)
    xp = xp.reshape(B, H // 2, 2 * W * Cin)

    def bcast(arr):  # full-array block, same for every grid step (VMEM-resident)
        shp = arr.shape
        return pl.BlockSpec(shp, lambda b, _n=len(shp): (0,) * _n)

    out = pl.pallas_call(
        _lenet_fused_kernel,
        out_shape=jax.ShapeDtypeStruct((B, 1, num_classes), jnp.float32),
        grid=(B,),
        in_specs=[
            pl.BlockSpec((1, H // 2, 2 * W * Cin), lambda b: (b, 0, 0)),
            bcast(prep["t1"]), bcast(prep["s1"]), bcast(prep["sh1"]),
            bcast(prep["t2"]), bcast(prep["s2"]), bcast(prep["sh2"]),
            bcast(prep["w1e"]), bcast(prep["b1"]),
            bcast(prep["w2"]), bcast(prep["b2"]),
            bcast(prep["w3"]), bcast(prep["b3"]),
        ],
        out_specs=pl.BlockSpec((1, 1, num_classes), lambda b: (b, 0, 0)),
        compiler_params=pltpu.CompilerParams(dimension_semantics=("parallel",)),
    )(xp, prep["t1"], prep["s1"], prep["sh1"], prep["t2"], prep["s2"],
      prep["sh2"], prep["w1e"], prep["b1"], prep["w2"], prep["b2"],
      prep["w3"], prep["b3"])
    return out.reshape(B, num_classes)


# ----------------------------------------------------------------------------
# Pure-JAX reference (eval-mode semantics of the PyTorch module) + params
# ----------------------------------------------------------------------------
def lenet_reference(x_nchw, p, eps=1e-5):
    def conv_bn_relu(x, w, b, g, be, m, v):
        y = jax.lax.conv_general_dilated(
            x, w, window_strides=(1, 1), padding="VALID",
            dimension_numbers=("NCHW", "OIHW", "NCHW"))
        y = y + b.reshape(1, -1, 1, 1)
        y = (y - m.reshape(1, -1, 1, 1)) * (g / jnp.sqrt(v + eps)).reshape(1, -1, 1, 1)
        y = y + be.reshape(1, -1, 1, 1)
        return jnp.maximum(y, 0.0)

    def pool(x):
        return jax.lax.reduce_window(x, -jnp.inf, jax.lax.max,
                                     (1, 1, 2, 2), (1, 1, 2, 2), "VALID")

    h = pool(conv_bn_relu(x_nchw, p["w1"], p["b1"], p["g1"], p["be1"], p["m1"], p["v1"]))
    h = pool(conv_bn_relu(h, p["w2"], p["b2"], p["g2"], p["be2"], p["m2"], p["v2"]))
    h = h.reshape(h.shape[0], -1)
    h = jnp.maximum(h @ p["fw1"].T + p["fb1"], 0.0)
    h = jnp.maximum(h @ p["fw2"].T + p["fb2"], 0.0)
    return h @ p["fw3"].T + p["fb3"]


def init_lenet_params(key, input_dim, num_classes=10):
    ks = jax.random.split(key, 8)
    f32 = jnp.float32
    return {
        "w1": 0.1 * jax.random.normal(ks[0], (6, input_dim, 5, 5), f32),
        "b1": 0.01 * jax.random.normal(ks[1], (6,), f32),
        "g1": jnp.ones((6,), f32) + 0.05 * jax.random.normal(ks[2], (6,), f32),
        "be1": jnp.zeros((6,), f32), "m1": jnp.zeros((6,), f32), "v1": jnp.ones((6,), f32),
        "w2": 0.1 * jax.random.normal(ks[3], (16, 6, 5, 5), f32),
        "b2": 0.01 * jax.random.normal(ks[4], (16,), f32),
        "g2": jnp.ones((16,), f32) + 0.05 * jax.random.normal(ks[5], (16,), f32),
        "be2": jnp.zeros((16,), f32), "m2": jnp.zeros((16,), f32), "v2": jnp.ones((16,), f32),
        "fw1": 0.05 * jax.random.normal(ks[6], (120, 16 * 5 * 5), f32),
        "fb1": jnp.zeros((120,), f32),
        "fw2": 0.05 * jax.random.normal(ks[7], (84, 120), f32),
        "fb2": jnp.zeros((84,), f32),
        "fw3": 0.05 * jax.random.normal(jax.random.fold_in(key, 99), (num_classes, 84), f32),
        "fb3": jnp.zeros((num_classes,), f32),
    }


if __name__ == "__main__":
    key = jax.random.PRNGKey(0)
    k_in, k_par = jax.random.split(key)

    batch, input_dim, num_classes = 2, 1, 10
    # 32x32 spatial is implied by the 16*5*5 flatten in the module.
    x = jax.random.normal(k_in, (batch, input_dim, 32, 32), jnp.float32)

    params = init_lenet_params(k_par, input_dim, num_classes)
    prep = prepare_params(params)                     # one-time weight prep

    fwd = jax.jit(lenet_forward)
    out = jax.block_until_ready(fwd(x, prep))

    assert out.shape == (batch, num_classes), out.shape
    assert bool(jnp.all(jnp.isfinite(out)))

    # Numerical sanity check against a pure-JAX f32 reference (bf16 MXU path
    # is slightly lossy, so use a generous bound).
    ref = lenet_reference(x, params)
    err = float(jnp.max(jnp.abs(out - ref)))
    scale = float(jnp.max(jnp.abs(ref)))
    assert err <= 0.05 + 0.1 * scale, (err, scale)

    print("KERNEL_OK")
</pallas_src>

<mosaic_0001>
module attributes {stable_mosaic.version = 11 : i64} {
  func.func @_lenet_fused_kernel(%arg0: i32, %arg1: memref<1x16x64xbf16, #tpu.memory_space<vmem>>, %arg2: memref<5x32x168xbf16, #tpu.memory_space<vmem>>, %arg3: memref<1x168xf32, #tpu.memory_space<vmem>>, %arg4: memref<1x168xf32, #tpu.memory_space<vmem>>, %arg5: memref<5x84x160xbf16, #tpu.memory_space<vmem>>, %arg6: memref<1x160xf32, #tpu.memory_space<vmem>>, %arg7: memref<1x160xf32, #tpu.memory_space<vmem>>, %arg8: memref<5x80x120xbf16, #tpu.memory_space<vmem>>, %arg9: memref<1x120xf32, #tpu.memory_space<vmem>>, %arg10: memref<120x84xbf16, #tpu.memory_space<vmem>>, %arg11: memref<1x84xf32, #tpu.memory_space<vmem>>, %arg12: memref<84x10xbf16, #tpu.memory_space<vmem>>, %arg13: memref<1x10xf32, #tpu.memory_space<vmem>>, %arg14: memref<1x1x10xf32, #tpu.memory_space<vmem>>) attributes {dimension_semantics = [#tpu.dimension_semantics<parallel>], iteration_bounds = array<i64: 2>, scalar_prefetch = 0 : i64, scratch_operands = 0 : i64, tpu.core_type = #tpu.core_type<tc>, window_params = [{transform_indices = @transform_0, window_bounds = array<i64: 1, 16, 64>}, {pipeline_mode = #tpu.pipeline_mode<synchronous>, transform_indices = @transform_1, window_bounds = array<i64: 5, 32, 168>}, {pipeline_mode = #tpu.pipeline_mode<synchronous>, transform_indices = @transform_2, window_bounds = array<i64: 1, 168>}, {pipeline_mode = #tpu.pipeline_mode<synchronous>, transform_indices = @transform_3, window_bounds = array<i64: 1, 168>}, {pipeline_mode = #tpu.pipeline_mode<synchronous>, transform_indices = @transform_4, window_bounds = array<i64: 5, 84, 160>}, {pipeline_mode = #tpu.pipeline_mode<synchronous>, transform_indices = @transform_5, window_bounds = array<i64: 1, 160>}, {pipeline_mode = #tpu.pipeline_mode<synchronous>, transform_indices = @transform_6, window_bounds = array<i64: 1, 160>}, {pipeline_mode = #tpu.pipeline_mode<synchronous>, transform_indices = @transform_7, window_bounds = array<i64: 5, 80, 120>}, {pipeline_mode = #tpu.pipeline_mode<synchronous>, transform_indices = @transform_8, window_bounds = array<i64: 1, 120>}, {pipeline_mode = #tpu.pipeline_mode<synchronous>, transform_indices = @transform_9, window_bounds = array<i64: 120, 84>}, {pipeline_mode = #tpu.pipeline_mode<synchronous>, transform_indices = @transform_10, window_bounds = array<i64: 1, 84>}, {pipeline_mode = #tpu.pipeline_mode<synchronous>, transform_indices = @transform_11, window_bounds = array<i64: 84, 10>}, {pipeline_mode = #tpu.pipeline_mode<synchronous>, transform_indices = @transform_12, window_bounds = array<i64: 1, 10>}, {transform_indices = @transform_13, window_bounds = array<i64: 1, 1, 10>}]} {
    %c0 = arith.constant 0 : index
    %c0_0 = arith.constant 0 : index
    %c0_1 = arith.constant 0 : index
    %0 = vector.load %arg1[%c0, %c0_0, %c0_1] : memref<1x16x64xbf16, #tpu.memory_space<vmem>>, vector<1x16x64xbf16>
    %1 = vector.shape_cast %0 : vector<1x16x64xbf16> to vector<16x64xbf16>
    %cst = arith.constant 0.000000e+00 : f32
    %2 = vector.broadcast %cst : f32 to vector<14x168xf32>
    %3 = vector.extract_strided_slice %1 {offsets = [0, 0], sizes = [14, 32], strides = [1, 1]} : vector<16x64xbf16> to vector<14x32xbf16>
    %c0_2 = arith.constant 0 : index
    %c0_3 = arith.constant 0 : index
    %c0_4 = arith.constant 0 : index
    %4 = vector.load %arg2[%c0_2, %c0_3, %c0_4] : memref<5x32x168xbf16, #tpu.memory_space<vmem>>, vector<1x32x168xbf16>
    %5 = vector.shape_cast %4 : vector<1x32x168xbf16> to vector<32x168xbf16>
    %cst_5 = arith.constant dense<0.000000e+00> : vector<14x168xf32>
    %6 = tpu.matmul %3, %5, %cst_5 {dimension_numbers = #tpu.dot_dimension_numbers<[1], [0], [0], [1], [0, 0, 1, 1], [], []>} : vector<14x32xbf16>, vector<32x168xbf16>, vector<14x168xf32> -> vector<14x168xf32>
    %7 = arith.addf %2, %6 : vector<14x168xf32>
    %8 = vector.extract_strided_slice %1 {offsets = [0, 32], sizes = [14, 32], strides = [1, 1]} : vector<16x64xbf16> to vector<14x32xbf16>
    %c1 = arith.constant 1 : index
    %c0_6 = arith.constant 0 : index
    %c0_7 = arith.constant 0 : index
    %9 = vector.load %arg2[%c1, %c0_6, %c0_7] : memref<5x32x168xbf16, #tpu.memory_space<vmem>>, vector<1x32x168xbf16>
    %10 = vector.shape_cast %9 : vector<1x32x168xbf16> to vector<32x168xbf16>
    %cst_8 = arith.constant dense<0.000000e+00> : vector<14x168xf32>
    %11 = tpu.matmul %8, %10, %cst_8 {dimension_numbers = #tpu.dot_dimension_numbers<[1], [0], [0], [1], [0, 0, 1, 1], [], []>} : vector<14x32xbf16>, vector<32x168xbf16>, vector<14x168xf32> -> vector<14x168xf32>
    %12 = arith.addf %7, %11 : vector<14x168xf32>
    %13 = vector.extract_strided_slice %1 {offsets = [1, 0], sizes = [14, 32], strides = [1, 1]} : vector<16x64xbf16> to vector<14x32xbf16>
    %c2 = arith.constant 2 : index
    %c0_9 = arith.constant 0 : index
    %c0_10 = arith.constant 0 : index
    %14 = vector.load %arg2[%c2, %c0_9, %c0_10] : memref<5x32x168xbf16, #tpu.memory_space<vmem>>, vector<1x32x168xbf16>
    %15 = vector.shape_cast %14 : vector<1x32x168xbf16> to vector<32x168xbf16>
    %cst_11 = arith.constant dense<0.000000e+00> : vector<14x168xf32>
    %16 = tpu.matmul %13, %15, %cst_11 {dimension_numbers = #tpu.dot_dimension_numbers<[1], [0], [0], [1], [0, 0, 1, 1], [], []>} : vector<14x32xbf16>, vector<32x168xbf16>, vector<14x168xf32> -> vector<14x168xf32>
    %17 = arith.addf %12, %16 : vector<14x168xf32>
    %18 = vector.extract_strided_slice %1 {offsets = [1, 32], sizes = [14, 32], strides = [1, 1]} : vector<16x64xbf16> to vector<14x32xbf16>
    %c3 = arith.constant 3 : index
    %c0_12 = arith.constant 0 : index
    %c0_13 = arith.constant 0 : index
    %19 = vector.load %arg2[%c3, %c0_12, %c0_13] : memref<5x32x168xbf16, #tpu.memory_space<vmem>>, vector<1x32x168xbf16>
    %20 = vector.shape_cast %19 : vector<1x32x168xbf16> to vector<32x168xbf16>
    %cst_14 = arith.constant dense<0.000000e+00> : vector<14x168xf32>
    %21 = tpu.matmul %18, %20, %cst_14 {dimension_numbers = #tpu.dot_dimension_numbers<[1], [0], [0], [1], [0, 0, 1, 1], [], []>} : vector<14x32xbf16>, vector<32x168xbf16>, vector<14x168xf32> -> vector<14x168xf32>
    %22 = arith.addf %17, %21 : vector<14x168xf32>
    %23 = vector.extract_strided_slice %1 {offsets = [2, 0], sizes = [14, 32], strides = [1, 1]} : vector<16x64xbf16> to vector<14x32xbf16>
    %c4 = arith.constant 4 : index
    %c0_15 = arith.constant 0 : index
    %c0_16 = arith.constant 0 : index
    %24 = vector.load %arg2[%c4, %c0_15, %c0_16] : memref<5x32x168xbf16, #tpu.memory_space<vmem>>, vector<1x32x168xbf16>
    %25 = vector.shape_cast %24 : vector<1x32x168xbf16> to vector<32x168xbf16>
    %cst_17 = arith.constant dense<0.000000e+00> : vector<14x168xf32>
    %26 = tpu.matmul %23, %25, %cst_17 {dimension_numbers = #tpu.dot_dimension_numbers<[1], [0], [0], [1], [0, 0, 1, 1], [], []>} : vector<14x32xbf16>, vector<32x168xbf16>, vector<14x168xf32> -> vector<14x168xf32>
    %27 = arith.addf %22, %26 : vector<14x168xf32>
    %c0_18 = arith.constant 0 : index
    %c0_19 = arith.constant 0 : index
    %28 = vector.load %arg3[%c0_18, %c0_19] : memref<1x168xf32, #tpu.memory_space<vmem>>, vector<1x168xf32>
    %29 = vector.broadcast %28 : vector<1x168xf32> to vector<14x168xf32>
    %30 = arith.mulf %27, %29 : vector<14x168xf32>
    %c0_20 = arith.constant 0 : index
    %c0_21 = arith.constant 0 : index
    %31 = vector.load %arg4[%c0_20, %c0_21] : memref<1x168xf32, #tpu.memory_space<vmem>>, vector<1x168xf32>
    %32 = vector.broadcast %31 : vector<1x168xf32> to vector<14x168xf32>
    %33 = arith.addf %30, %32 : vector<14x168xf32>
    %cst_22 = arith.constant 0.000000e+00 : f32
    %34 = vector.broadcast %cst_22 : f32 to vector<14x168xf32>
    %35 = arith.maximumf %33, %34 : vector<14x168xf32>
    %36 = vector.extract_strided_slice %35 {offsets = [0, 0], sizes = [14, 84], strides = [1, 1]} : vector<14x168xf32> to vector<14x84xf32>
    %37 = vector.extract_strided_slice %35 {offsets = [0, 84], sizes = [14, 84], strides = [1, 1]} : vector<14x168xf32> to vector<14x84xf32>
    %38 = arith.maximumf %36, %37 : vector<14x84xf32>
    %cst_23 = arith.constant 0.000000e+00 : f32
    %39 = vector.broadcast %cst_23 : f32 to vector<14x168xf32>
    %40 = vector.extract_strided_slice %1 {offsets = [0, 32], sizes = [14, 32], strides = [1, 1]} : vector<16x64xbf16> to vector<14x32xbf16>
    %c0_24 = arith.constant 0 : index
    %c0_25 = arith.constant 0 : index
    %c0_26 = arith.constant 0 : index
    %41 = vector.load %arg2[%c0_24, %c0_25, %c0_26] : memref<5x32x168xbf16, #tpu.memory_space<vmem>>, vector<1x32x168xbf16>
    %42 = vector.shape_cast %41 : vector<1x32x168xbf16> to vector<32x168xbf16>
    %cst_27 = arith.constant dense<0.000000e+00> : vector<14x168xf32>
    %43 = tpu.matmul %40, %42, %cst_27 {dimension_numbers = #tpu.dot_dimension_numbers<[1], [0], [0], [1], [0, 0, 1, 1], [], []>} : vector<14x32xbf16>, vector<32x168xbf16>, vector<14x168xf32> -> vector<14x168xf32>
    %44 = arith.addf %39, %43 : vector<14x168xf32>
    %45 = vector.extract_strided_slice %1 {offsets = [1, 0], sizes = [14, 32], strides = [1, 1]} : vector<16x64xbf16> to vector<14x32xbf16>
    %c1_28 = arith.constant 1 : index
    %c0_29 = arith.constant 0 : index
    %c0_30 = arith.constant 0 : index
    %46 = vector.load %arg2[%c1_28, %c0_29, %c0_30] : memref<5x32x168xbf16, #tpu.memory_space<vmem>>, vector<1x32x168xbf16>
    %47 = vector.shape_cast %46 : vector<1x32x168xbf16> to vector<32x168xbf16>
    %cst_31 = arith.constant dense<0.000000e+00> : vector<14x168xf32>
    %48 = tpu.matmul %45, %47, %cst_31 {dimension_numbers = #tpu.dot_dimension_numbers<[1], [0], [0], [1], [0, 0, 1, 1], [], []>} : vector<14x32xbf16>, vector<32x168xbf16>, vector<14x168xf32> -> vector<14x168xf32>
    %49 = arith.addf %44, %48 : vector<14x168xf32>
    %50 = vector.extract_strided_slice %1 {offsets = [1, 32], sizes = [14, 32], strides = [1, 1]} : vector<16x64xbf16> to vector<14x32xbf16>
    %c2_32 = arith.constant 2 : index
    %c0_33 = arith.constant 0 : index
    %c0_34 = arith.constant 0 : index
    %51 = vector.load %arg2[%c2_32, %c0_33, %c0_34] : memref<5x32x168xbf16, #tpu.memory_space<vmem>>, vector<1x32x168xbf16>
    %52 = vector.shape_cast %51 : vector<1x32x168xbf16> to vector<32x168xbf16>
    %cst_35 = arith.constant dense<0.000000e+00> : vector<14x168xf32>
    %53 = tpu.matmul %50, %52, %cst_35 {dimension_numbers = #tpu.dot_dimension_numbers<[1], [0], [0], [1], [0, 0, 1, 1], [], []>} : vector<14x32xbf16>, vector<32x168xbf16>, vector<14x168xf32> -> vector<14x168xf32>
    %54 = arith.addf %49, %53 : vector<14x168xf32>
    %55 = vector.extract_strided_slice %1 {offsets = [2, 0], sizes = [14, 32], strides = [1, 1]} : vector<16x64xbf16> to vector<14x32xbf16>
    %c3_36 = arith.constant 3 : index
    %c0_37 = arith.constant 0 : index
    %c0_38 = arith.constant 0 : index
    %56 = vector.load %arg2[%c3_36, %c0_37, %c0_38] : memref<5x32x168xbf16, #tpu.memory_space<vmem>>, vector<1x32x168xbf16>
    %57 = vector.shape_cast %56 : vector<1x32x168xbf16> to vector<32x168xbf16>
    %cst_39 = arith.constant dense<0.000000e+00> : vector<14x168xf32>
    %58 = tpu.matmul %55, %57, %cst_39 {dimension_numbers = #tpu.dot_dimension_numbers<[1], [0], [0], [1], [0, 0, 1, 1], [], []>} : vector<14x32xbf16>, vector<32x168xbf16>, vector<14x168xf32> -> vector<14x168xf32>
    %59 = arith.addf %54, %58 : vector<14x168xf32>
    %60 = vector.extract_strided_slice %1 {offsets = [2, 32], sizes = [14, 32], strides = [1, 1]} : vector<16x64xbf16> to vector<14x32xbf16>
    %c4_40 = arith.constant 4 : index
    %c0_41 = arith.constant 0 : index
    %c0_42 = arith.constant 0 : index
    %61 = vector.load %arg2[%c4_40, %c0_41, %c0_42] : memref<5x32x168xbf16, #tpu.memory_space<vmem>>, vector<1x32x168xbf16>
    %62 = vector.shape_cast %61 : vector<1x32x168xbf16> to vector<32x168xbf16>
    %cst_43 = arith.constant dense<0.000000e+00> : vector<14x168xf32>
    %63 = tpu.matmul %60, %62, %cst_43 {dimension_numbers = #tpu.dot_dimension_numbers<[1], [0], [0], [1], [0, 0, 1, 1], [], []>} : vector<14x32xbf16>, vector<32x168xbf16>, vector<14x168xf32> -> vector<14x168xf32>
    %64 = arith.addf %59, %63 : vector<14x168xf32>
    %c0_44 = arith.constant 0 : index
    %c0_45 = arith.constant 0 : index
    %65 = vector.load %arg3[%c0_44, %c0_45] : memref<1x168xf32, #tpu.memory_space<vmem>>, vector<1x168xf32>
    %66 = vector.broadcast %65 : vector<1x168xf32> to vector<14x168xf32>
    %67 = arith.mulf %64, %66 : vector<14x168xf32>
    %c0_46 = arith.constant 0 : index
    %c0_47 = arith.constant 0 : index
    %68 = vector.load %arg4[%c0_46, %c0_47] : memref<1x168xf32, #tpu.memory_space<vmem>>, vector<1x168xf32>
    %69 = vector.broadcast %68 : vector<1x168xf32> to vector<14x168xf32>
    %70 = arith.addf %67, %69 : vector<14x168xf32>
    %cst_48 = arith.constant 0.000000e+00 : f32
    %71 = vector.broadcast %cst_48 : f32 to vector<14x168xf32>
    %72 = arith.maximumf %70, %71 : vector<14x168xf32>
    %73 = vector.extract_strided_slice %72 {offsets = [0, 0], sizes = [14, 84], strides = [1, 1]} : vector<14x168xf32> to vector<14x84xf32>
    %74 = vector.extract_strided_slice %72 {offsets = [0, 84], sizes = [14, 84], strides = [1, 1]} : vector<14x168xf32> to vector<14x84xf32>
    %75 = arith.maximumf %73, %74 : vector<14x84xf32>
    %76 = arith.maximumf %38, %75 : vector<14x84xf32>
    %cst_49 = arith.constant 0.000000e+00 : f32
    %77 = vector.broadcast %cst_49 : f32 to vector<10x160xf32>
    %78 = vector.extract_strided_slice %76 {offsets = [0, 0], sizes = [10, 84], strides = [1, 1]} : vector<14x84xf32> to vector<10x84xf32>
    %79 = arith.truncf %78 : vector<10x84xf32> to vector<10x84xbf16>
    %c0_50 = arith.constant 0 : index
    %c0_51 = arith.constant 0 : index
    %c0_52 = arith.constant 0 : index
    %80 = vector.load %arg5[%c0_50, %c0_51, %c0_52] : memref<5x84x160xbf16, #tpu.memory_space<vmem>>, vector<1x84x160xbf16>
    %81 = vector.shape_cast %80 : vector<1x84x160xbf16> to vector<84x160xbf16>
    %cst_53 = arith.constant dense<0.000000e+00> : vector<10x160xf32>
    %82 = tpu.matmul %79, %81, %cst_53 {dimension_numbers = #tpu.dot_dimension_numbers<[1], [0], [0], [1], [0, 0, 1, 1], [], []>} : vector<10x84xbf16>, vector<84x160xbf16>, vector<10x160xf32> -> vector<10x160xf32>
    %83 = arith.addf %77, %82 : vector<10x160xf32>
    %84 = vector.extract_strided_slice %76 {offsets = [1, 0], sizes = [10, 84], strides = [1, 1]} : vector<14x84xf32> to vector<10x84xf32>
    %85 = arith.truncf %84 : vector<10x84xf32> to vector<10x84xbf16>
    %c1_54 = arith.constant 1 : index
    %c0_55 = arith.constant 0 : index
    %c0_56 = arith.constant 0 : index
    %86 = vector.load %arg5[%c1_54, %c0_55, %c0_56] : memref<5x84x160xbf16, #tpu.memory_space<vmem>>, vector<1x84x160xbf16>
    %87 = vector.shape_cast %86 : vector<1x84x160xbf16> to vector<84x160xbf16>
    %cst_57 = arith.constant dense<0.000000e+00> : vector<10x160xf32>
    %88 = tpu.matmul %85, %87, %cst_57 {dimension_numbers = #tpu.dot_dimension_numbers<[1], [0], [0], [1], [0, 0, 1, 1], [], []>} : vector<10x84xbf16>, vector<84x160xbf16>, vector<10x160xf32> -> vector<10x160xf32>
    %89 = arith.addf %83, %88 : vector<10x160xf32>
    %90 = vector.extract_strided_slice %76 {offsets = [2, 0], sizes = [10, 84], strides = [1, 1]} : vector<14x84xf32> to vector<10x84xf32>
    %91 = arith.truncf %90 : vector<10x84xf32> to vector<10x84xbf16>
    %c2_58 = arith.constant 2 : index
    %c0_59 = arith.constant 0 : index
    %c0_60 = arith.constant 0 : index
    %92 = vector.load %arg5[%c2_58, %c0_59, %c0_60] : memref<5x84x160xbf16, #tpu.memory_space<vmem>>, vector<1x84x160xbf16>
    %93 = vector.shape_cast %92 : vector<1x84x160xbf16> to vector<84x160xbf16>
    %cst_61 = arith.constant dense<0.000000e+00> : vector<10x160xf32>
    %94 = tpu.matmul %91, %93, %cst_61 {dimension_numbers = #tpu.dot_dimension_numbers<[1], [0], [0], [1], [0, 0, 1, 1], [], []>} : vector<10x84xbf16>, vector<84x160xbf16>, vector<10x160xf32> -> vector<10x160xf32>
    %95 = arith.addf %89, %94 : vector<10x160xf32>
    %96 = vector.extract_strided_slice %76 {offsets = [3, 0], sizes = [10, 84], strides = [1, 1]} : vector<14x84xf32> to vector<10x84xf32>
    %97 = arith.truncf %96 : vector<10x84xf32> to vector<10x84xbf16>
    %c3_62 = arith.constant 3 : index
    %c0_63 = arith.constant 0 : index
    %c0_64 = arith.constant 0 : index
    %98 = vector.load %arg5[%c3_62, %c0_63, %c0_64] : memref<5x84x160xbf16, #tpu.memory_space<vmem>>, vector<1x84x160xbf16>
    %99 = vector.shape_cast %98 : vector<1x84x160xbf16> to vector<84x160xbf16>
    %cst_65 = arith.constant dense<0.000000e+00> : vector<10x160xf32>
    %100 = tpu.matmul %97, %99, %cst_65 {dimension_numbers = #tpu.dot_dimension_numbers<[1], [0], [0], [1], [0, 0, 1, 1], [], []>} : vector<10x84xbf16>, vector<84x160xbf16>, vector<10x160xf32> -> vector<10x160xf32>
    %101 = arith.addf %95, %100 : vector<10x160xf32>
    %102 = vector.extract_strided_slice %76 {offsets = [4, 0], sizes = [10, 84], strides = [1, 1]} : vector<14x84xf32> to vector<10x84xf32>
    %103 = arith.truncf %102 : vector<10x84xf32> to vector<10x84xbf16>
    %c4_66 = arith.constant 4 : index
    %c0_67 = arith.constant 0 : index
    %c0_68 = arith.constant 0 : index
    %104 = vector.load %arg5[%c4_66, %c0_67, %c0_68] : memref<5x84x160xbf16, #tpu.memory_space<vmem>>, vector<1x84x160xbf16>
    %105 = vector.shape_cast %104 : vector<1x84x160xbf16> to vector<84x160xbf16>
    %cst_69 = arith.constant dense<0.000000e+00> : vector<10x160xf32>
    %106 = tpu.matmul %103, %105, %cst_69 {dimension_numbers = #tpu.dot_dimension_numbers<[1], [0], [0], [1], [0, 0, 1, 1], [], []>} : vector<10x84xbf16>, vector<84x160xbf16>, vector<10x160xf32> -> vector<10x160xf32>
    %107 = arith.addf %101, %106 : vector<10x160xf32>
    %c0_70 = arith.constant 0 : index
    %c0_71 = arith.constant 0 : index
    %108 = vector.load %arg6[%c0_70, %c0_71] : memref<1x160xf32, #tpu.memory_space<vmem>>, vector<1x160xf32>
    %109 = vector.broadcast %108 : vector<1x160xf32> to vector<10x160xf32>
    %110 = arith.mulf %107, %109 : vector<10x160xf32>
    %c0_72 = arith.constant 0 : index
    %c0_73 = arith.constant 0 : index
    %111 = vector.load %arg7[%c0_72, %c0_73] : memref<1x160xf32, #tpu.memory_space<vmem>>, vector<1x160xf32>
    %112 = vector.broadcast %111 : vector<1x160xf32> to vector<10x160xf32>
    %113 = arith.addf %110, %112 : vector<10x160xf32>
    %cst_74 = arith.constant 0.000000e+00 : f32
    %114 = vector.broadcast %cst_74 : f32 to vector<10x160xf32>
    %115 = arith.maximumf %113, %114 : vector<10x160xf32>
    %116 = vector.extract_strided_slice %115 {offsets = [0, 0], sizes = [10, 80], strides = [1, 1]} : vector<10x160xf32> to vector<10x80xf32>
    %117 = vector.extract_strided_slice %115 {offsets = [0, 80], sizes = [10, 80], strides = [1, 1]} : vector<10x160xf32> to vector<10x80xf32>
    %118 = arith.maximumf %116, %117 : vector<10x80xf32>
    %cst_75 = arith.constant 0.000000e+00 : f32
    %119 = vector.broadcast %cst_75 : f32 to vector<1x120xf32>
    %120 = vector.extract_strided_slice %118 {offsets = [0, 0], sizes = [1, 80], strides = [1, 1]} : vector<10x80xf32> to vector<1x80xf32>
    %121 = vector.extract_strided_slice %118 {offsets = [1, 0], sizes = [1, 80], strides = [1, 1]} : vector<10x80xf32> to vector<1x80xf32>
    %122 = arith.maximumf %120, %121 : vector<1x80xf32>
    %123 = arith.truncf %122 : vector<1x80xf32> to vector<1x80xbf16>
    %c0_76 = arith.constant 0 : index
    %c0_77 = arith.constant 0 : index
    %c0_78 = arith.constant 0 : index
    %124 = vector.load %arg8[%c0_76, %c0_77, %c0_78] : memref<5x80x120xbf16, #tpu.memory_space<vmem>>, vector<1x80x120xbf16>
    %125 = vector.shape_cast %124 : vector<1x80x120xbf16> to vector<80x120xbf16>
    %cst_79 = arith.constant dense<0.000000e+00> : vector<1x120xf32>
    %126 = tpu.matmul %123, %125, %cst_79 {dimension_numbers = #tpu.dot_dimension_numbers<[1], [0], [0], [1], [0, 0, 1, 1], [], []>} : vector<1x80xbf16>, vector<80x120xbf16>, vector<1x120xf32> -> vector<1x120xf32>
    %127 = arith.addf %119, %126 : vector<1x120xf32>
    %128 = vector.extract_strided_slice %118 {offsets = [2, 0], sizes = [1, 80], strides = [1, 1]} : vector<10x80xf32> to vector<1x80xf32>
    %129 = vector.extract_strided_slice %118 {offsets = [3, 0], sizes = [1, 80], strides = [1, 1]} : vector<10x80xf32> to vector<1x80xf32>
    %130 = arith.maximumf %128, %129 : vector<1x80xf32>
    %131 = arith.truncf %130 : vector<1x80xf32> to vector<1x80xbf16>
    %c1_80 = arith.constant 1 : index
    %c0_81 = arith.constant 0 : index
    %c0_82 = arith.constant 0 : index
    %132 = vector.load %arg8[%c1_80, %c0_81, %c0_82] : memref<5x80x120xbf16, #tpu.memory_space<vmem>>, vector<1x80x120xbf16>
    %133 = vector.shape_cast %132 : vector<1x80x120xbf16> to vector<80x120xbf16>
    %cst_83 = arith.constant dense<0.000000e+00> : vector<1x120xf32>
    %134 = tpu.matmul %131, %133, %cst_83 {dimension_numbers = #tpu.dot_dimension_numbers<[1], [0], [0], [1], [0, 0, 1, 1], [], []>} : vector<1x80xbf16>, vector<80x120xbf16>, vector<1x120xf32> -> vector<1x120xf32>
    %135 = arith.addf %127, %134 : vector<1x120xf32>
    %136 = vector.extract_strided_slice %118 {offsets = [4, 0], sizes = [1, 80], strides = [1, 1]} : vector<10x80xf32> to vector<1x80xf32>
    %137 = vector.extract_strided_slice %118 {offsets = [5, 0], sizes = [1, 80], strides = [1, 1]} : vector<10x80xf32> to vector<1x80xf32>
    %138 = arith.maximumf %136, %137 : vector<1x80xf32>
    %139 = arith.truncf %138 : vector<1x80xf32> to vector<1x80xbf16>
    %c2_84 = arith.constant 2 : index
    %c0_85 = arith.constant 0 : index
    %c0_86 = arith.constant 0 : index
    %140 = vector.load %arg8[%c2_84, %c0_85, %c0_86] : memref<5x80x120xbf16, #tpu.memory_space<vmem>>, vector<1x80x120xbf16>
    %141 = vector.shape_cast %140 : vector<1x80x120xbf16> to vector<80x120xbf16>
    %cst_87 = arith.constant dense<0.000000e+00> : vector<1x120xf32>
    %142 = tpu.matmul %139, %141, %cst_87 {dimension_numbers = #tpu.dot_dimension_numbers<[1], [0], [0], [1], [0, 0, 1, 1], [], []>} : vector<1x80xbf16>, vector<80x120xbf16>, vector<1x120xf32> -> vector<1x120xf32>
    %143 = arith.addf %135, %142 : vector<1x120xf32>
    %144 = vector.extract_strided_slice %118 {offsets = [6, 0], sizes = [1, 80], strides = [1, 1]} : vector<10x80xf32> to vector<1x80xf32>
    %145 = vector.extract_strided_slice %118 {offsets = [7, 0], sizes = [1, 80], strides = [1, 1]} : vector<10x80xf32> to vector<1x80xf32>
    %146 = arith.maximumf %144, %145 : vector<1x80xf32>
    %147 = arith.truncf %146 : vector<1x80xf32> to vector<1x80xbf16>
    %c3_88 = arith.constant 3 : index
    %c0_89 = arith.constant 0 : index
    %c0_90 = arith.constant 0 : index
    %148 = vector.load %arg8[%c3_88, %c0_89, %c0_90] : memref<5x80x120xbf16, #tpu.memory_space<vmem>>, vector<1x80x120xbf16>
    %149 = vector.shape_cast %148 : vector<1x80x120xbf16> to vector<80x120xbf16>
    %cst_91 = arith.constant dense<0.000000e+00> : vector<1x120xf32>
    %150 = tpu.matmul %147, %149, %cst_91 {dimension_numbers = #tpu.dot_dimension_numbers<[1], [0], [0], [1], [0, 0, 1, 1], [], []>} : vector<1x80xbf16>, vector<80x120xbf16>, vector<1x120xf32> -> vector<1x120xf32>
    %151 = arith.addf %143, %150 : vector<1x120xf32>
    %152 = vector.extract_strided_slice %118 {offsets = [8, 0], sizes = [1, 80], strides = [1, 1]} : vector<10x80xf32> to vector<1x80xf32>
    %153 = vector.extract_strided_slice %118 {offsets = [9, 0], sizes = [1, 80], strides = [1, 1]} : vector<10x80xf32> to vector<1x80xf32>
    %154 = arith.maximumf %152, %153 : vector<1x80xf32>
    %155 = arith.truncf %154 : vector<1x80xf32> to vector<1x80xbf16>
    %c4_92 = arith.constant 4 : index
    %c0_93 = arith.constant 0 : index
    %c0_94 = arith.constant 0 : index
    %156 = vector.load %arg8[%c4_92, %c0_93, %c0_94] : memref<5x80x120xbf16, #tpu.memory_space<vmem>>, vector<1x80x120xbf16>
    %157 = vector.shape_cast %156 : vector<1x80x120xbf16> to vector<80x120xbf16>
    %cst_95 = arith.constant dense<0.000000e+00> : vector<1x120xf32>
    %158 = tpu.matmul %155, %157, %cst_95 {dimension_numbers = #tpu.dot_dimension_numbers<[1], [0], [0], [1], [0, 0, 1, 1], [], []>} : vector<1x80xbf16>, vector<80x120xbf16>, vector<1x120xf32> -> vector<1x120xf32>
    %159 = arith.addf %151, %158 : vector<1x120xf32>
    %c0_96 = arith.constant 0 : index
    %c0_97 = arith.constant 0 : index
    %160 = vector.load %arg9[%c0_96, %c0_97] : memref<1x120xf32, #tpu.memory_space<vmem>>, vector<1x120xf32>
    %161 = arith.addf %159, %160 : vector<1x120xf32>
    %cst_98 = arith.constant 0.000000e+00 : f32
    %162 = vector.broadcast %cst_98 : f32 to vector<1x120xf32>
    %163 = arith.maximumf %161, %162 : vector<1x120xf32>
    %164 = arith.truncf %163 : vector<1x120xf32> to vector<1x120xbf16>
    %c0_99 = arith.constant 0 : index
    %c0_100 = arith.constant 0 : index
    %165 = vector.load %arg10[%c0_99, %c0_100] : memref<120x84xbf16, #tpu.memory_space<vmem>>, vector<120x84xbf16>
    %cst_101 = arith.constant dense<0.000000e+00> : vector<1x84xf32>
    %166 = tpu.matmul %164, %165, %cst_101 {dimension_numbers = #tpu.dot_dimension_numbers<[1], [0], [0], [1], [0, 0, 1, 1], [], []>} : vector<1x120xbf16>, vector<120x84xbf16>, vector<1x84xf32> -> vector<1x84xf32>
    %c0_102 = arith.constant 0 : index
    %c0_103 = arith.constant 0 : index
    %167 = vector.load %arg11[%c0_102, %c0_103] : memref<1x84xf32, #tpu.memory_space<vmem>>, vector<1x84xf32>
    %168 = arith.addf %166, %167 : vector<1x84xf32>
    %cst_104 = arith.constant 0.000000e+00 : f32
    %169 = vector.broadcast %cst_104 : f32 to vector<1x84xf32>
    %170 = arith.maximumf %168, %169 : vector<1x84xf32>
    %171 = arith.truncf %170 : vector<1x84xf32> to vector<1x84xbf16>
    %c0_105 = arith.constant 0 : index
    %c0_106 = arith.constant 0 : index
    %172 = vector.load %arg12[%c0_105, %c0_106] : memref<84x10xbf16, #tpu.memory_space<vmem>>, vector<84x10xbf16>
    %cst_107 = arith.constant dense<0.000000e+00> : vector<1x10xf32>
    %173 = tpu.matmul %171, %172, %cst_107 {dimension_numbers = #tpu.dot_dimension_numbers<[1], [0], [0], [1], [0, 0, 1, 1], [], []>} : vector<1x84xbf16>, vector<84x10xbf16>, vector<1x10xf32> -> vector<1x10xf32>
    %c0_108 = arith.constant 0 : index
    %c0_109 = arith.constant 0 : index
    %174 = vector.load %arg13[%c0_108, %c0_109] : memref<1x10xf32, #tpu.memory_space<vmem>>, vector<1x10xf32>
    %175 = arith.addf %173, %174 : vector<1x10xf32>
    %c0_110 = arith.constant 0 : index
    %c0_111 = arith.constant 0 : index
    %c0_112 = arith.constant 0 : index
    %176 = vector.load %arg14[%c0_110, %c0_111, %c0_112] : memref<1x1x10xf32, #tpu.memory_space<vmem>>, vector<1x1x10xf32>
    %177 = vector.shape_cast %176 : vector<1x1x10xf32> to vector<1x10xf32>
    %178 = vector.shape_cast %175 : vector<1x10xf32> to vector<1x1x10xf32>
    tpu.vector_store %arg14[%c0_110, %c0_111, %c0_112], %178 {strides = array<i32>} : memref<1x1x10xf32, #tpu.memory_space<vmem>>, vector<1x1x10xf32>,
    return
  }
  func.func @transform_0(%arg0: i32) -> (i32, i32, i32) {
    %c0_i32 = arith.constant 0 : i32
    %c0_i32_0 = arith.constant 0 : i32
    %c0_i32_1 = arith.constant 0 : i32
    return %arg0, %c0_i32, %c0_i32_0 : i32, i32, i32
  }
  func.func @transform_1(%arg0: i32) -> (i32, i32, i32) {
    %c0_i32 = arith.constant 0 : i32
    %c0_i32_0 = arith.constant 0 : i32
    %c0_i32_1 = arith.constant 0 : i32
    %c0_i32_2 = arith.constant 0 : i32
    return %c0_i32, %c0_i32_0, %c0_i32_1 : i32, i32, i32
  }
  func.func @transform_2(%arg0: i32) -> (i32, i32) {
    %c0_i32 = arith.constant 0 : i32
    %c0_i32_0 = arith.constant 0 : i32
    %c0_i32_1 = arith.constant 0 : i32
    return %c0_i32, %c0_i32_0 : i32, i32
  }
  func.func @transform_3(%arg0: i32) -> (i32, i32) {
    %c0_i32 = arith.constant 0 : i32
    %c0_i32_0 = arith.constant 0 : i32
    %c0_i32_1 = arith.constant 0 : i32
    return %c0_i32, %c0_i32_0 : i32, i32
  }
  func.func @transform_4(%arg0: i32) -> (i32, i32, i32) {
    %c0_i32 = arith.constant 0 : i32
    %c0_i32_0 = arith.constant 0 : i32
    %c0_i32_1 = arith.constant 0 : i32
    %c0_i32_2 = arith.constant 0 : i32
    return %c0_i32, %c0_i32_0, %c0_i32_1 : i32, i32, i32
  }
  func.func @transform_5(%arg0: i32) -> (i32, i32) {
    %c0_i32 = arith.constant 0 : i32
    %c0_i32_0 = arith.constant 0 : i32
    %c0_i32_1 = arith.constant 0 : i32
    return %c0_i32, %c0_i32_0 : i32, i32
  }
  func.func @transform_6(%arg0: i32) -> (i32, i32) {
    %c0_i32 = arith.constant 0 : i32
    %c0_i32_0 = arith.constant 0 : i32
    %c0_i32_1 = arith.constant 0 : i32
    return %c0_i32, %c0_i32_0 : i32, i32
  }
  func.func @transform_7(%arg0: i32) -> (i32, i32, i32) {
    %c0_i32 = arith.constant 0 : i32
    %c0_i32_0 = arith.constant 0 : i32
    %c0_i32_1 = arith.constant 0 : i32
    %c0_i32_2 = arith.constant 0 : i32
    return %c0_i32, %c0_i32_0, %c0_i32_1 : i32, i32, i32
  }
  func.func @transform_8(%arg0: i32) -> (i32, i32) {
    %c0_i32 = arith.constant 0 : i32
    %c0_i32_0 = arith.constant 0 : i32
    %c0_i32_1 = arith.constant 0 : i32
    return %c0_i32, %c0_i32_0 : i32, i32
  }
  func.func @transform_9(%arg0: i32) -> (i32, i32) {
    %c0_i32 = arith.constant 0 : i32
    %c0_i32_0 = arith.constant 0 : i32
    %c0_i32_1 = arith.constant 0 : i32
    return %c0_i32, %c0_i32_0 : i32, i32
  }
  func.func @transform_10(%arg0: i32) -> (i32, i32) {
    %c0_i32 = arith.constant 0 : i32
    %c0_i32_0 = arith.constant 0 : i32
    %c0_i32_1 = arith.constant 0 : i32
    return %c0_i32, %c0_i32_0 : i32, i32
  }
  func.func @transform_11(%arg0: i32) -> (i32, i32) {
    %c0_i32 = arith.constant 0 : i32
    %c0_i32_0 = arith.constant 0 : i32
    %c0_i32_1 = arith.constant 0 : i32
    return %c0_i32, %c0_i32_0 : i32, i32
  }
  func.func @transform_12(%arg0: i32) -> (i32, i32) {
    %c0_i32 = arith.constant 0 : i32
    %c0_i32_0 = arith.constant 0 : i32
    %c0_i32_1 = arith.constant 0 : i32
    return %c0_i32, %c0_i32_0 : i32, i32
  }
  func.func @transform_13(%arg0: i32) -> (i32, i32, i32) {
    %c0_i32 = arith.constant 0 : i32
    %c0_i32_0 = arith.constant 0 : i32
    %c0_i32_1 = arith.constant 0 : i32
    return %arg0, %c0_i32, %c0_i32_0 : i32, i32, i32
  }
}

</mosaic_0001>

<bundles_post_ra>
// kernel: lenet_forward.1
= control target key start
LH: loop header
LB: loop body
LE: loop exit
PB: predicated region body
PF: predicated region fallthrough
CT: control target
= control target key end

     0   :  { %18 = vsyncpa [#allocation3], 0  ;;  %s3966_s0 = inlined_call_operand.vmem [shape: bf16[2,16,64], index: 0, kind: input, shape index: {}]   ;;  %s3967_s1 = inlined_call_operand.vmem [shape: bf16[5,32,168], index: 1, kind: input, shape index: {}]   ;;  %s3968_s2 = inlined_call_operand.vmem [shape: f32[1,168], index: 2, kind: input, shape index: {}]   ;;  %s3969_s3 = inlined_call_operand.vmem [shape: f32[1,168], index: 3, kind: input, shape index: {}]   ;;  %s3970_s4 = inlined_call_operand.vmem [shape: bf16[5,84,160], index: 4, kind: input, shape index: {}]   ;;  %s3971_s5 = inlined_call_operand.vmem [shape: f32[1,160], index: 5, kind: input, shape index: {}]   ;;  %s3972_s6 = inlined_call_operand.vmem [shape: f32[1,160], index: 6, kind: input, shape index: {}]   ;;  %s3973_s7 = inlined_call_operand.vmem [shape: bf16[5,80,120], index: 7, kind: input, shape index: {}]   ;;  %s3974_s8 = inlined_call_operand.vmem [shape: f32[1,120], index: 8, kind: input, shape index: {}]   ;;  %s3975_s9 = inlined_call_operand.vmem [shape: bf16[120,84], index: 9, kind: input, shape index: {}]   ;;  %s3976_s10 = inlined_call_operand.vmem [shape: f32[1,84], index: 10, kind: input, shape index: {}]   ;;  %s3977_s11 = inlined_call_operand.vmem [shape: bf16[84,10], index: 11, kind: input, shape index: {}]   ;;  %s3978_s12 = inlined_call_operand.vmem [shape: f32[1,10], index: 12, kind: input, shape index: {}]   ;;  %s3979_s13 = inlined_call_operand.hbm [shape: f32[2,1,10], index: 13, kind: output, shape index: {}]  }
   0x1   :  { %20 = vsyncpa [#allocation3 + $0x1], 0  ;;  %s3310_s25 = smov 0   ;;  %s3312_s26 = smov 0  }
   0x2   :  { %s3314_s27 = smov 0   ;;  %s3316_s28 = smov 0  }
   0x3 LB: > { %3983 = sst [smem:[#allocation5_spill]] %s3227_s27  ;;  %s3331_s29 = sadd.s32 4294967295, %s3231_s28   ;;  %s3231_s28 = sphi %s3316_s28, %s3988_s28   ;;  %s3227_s27 = sphi %s3314_s27, %s3990_s27   ;;  %s3223_s26 = sphi %s3312_s26, %s3992_s26   ;;  %s3219_s25 = sphi %s3310_s25, %s3991_s25  }
   0x4   : > { %s2532_s30 = sadd.s32 4294967294, %s3231_s28   ;;  %s3335_s14 = sadd.s32 1, %s3231_s28  }
   0x5   : > { %3984 = sst [smem:[#allocation6_spill]] %s3335_s14  ;;  %s311_s15 = sadd.s32 1, %s3227_s27 }
   0x6   : > { %s308_s16 = ssub.s32 %s3231_s28, %s3335_s14  ;;  %p321_p0 = scmp.ne.s32.totalorder %s3227_s27, %s3223_s26 }
   0x7   : > { %p309_p1 = scmp.eq.s32.totalorder %s308_s16, 0  ;;  %p322_p2 = scmp.eq.s32.totalorder %s3331_s29, 1 }
   0x8   : > { %p327_p3 = scmp.ne.s32.totalorder %s3223_s26, %s3219_s25  ;;  %p328_p4 = scmp.eq.s32.totalorder %s2532_s30, 1 }
   0x9   : > { %s3346_s17 = scalar_select %p309_p1, %s3227_s27, %s311_s15  }
   0xa   : > { %p3348_p5 = por %p322_p2, %p321_p0  ;;  %p3352_p6 = por %p328_p4, %p327_p3 }
   0xb   : > { %3985 = sst [smem:[#allocation7_spill]] %s3346_s17  ;;  %p2535_p7 = scmp.ge.s32.totalorder %s3231_s28, 1 }
   0xc   : > { %p390_p8 = scmp.lt.s32.totalorder %s3231_s28, 3 }
   0xe   : > { %p391_p9 = pnand %p2535_p7, %p390_p8 }
   0xf   : > { %p433_p10 = scmp.lt.s32.totalorder (!%p391_p9), %s3331_s29, 1  ;;  %s3235_s16 = smov (!%p391_p9), 44  }
  0x10   : > { %394 = sbr.rel (%p391_p9) target bundleno = 1546 (0x60a), region = 72  ;;  %s3238_s23 = smov (!%p391_p9), 48  }
  0x11   : > { %s431_s21 = sand.u32 (!%p391_p9), 1, %s3223_s26   ;;  %s3239_s20 = smov (!%p391_p9), [#allocation2]  }
  0x12   : > { %s432_s27 = scalar_lea.vmem (!%p391_p9), [#allocation2], %s431_s21  ;;  %s2465_s15 = scalar_lea.sflag (!%p391_p9), [#allocation3], %s431_s21 }
  0x15   : > { %v3362_v0 = vld [vmem:[%s3967_s1 + $0x14] ss:$8 sps:$4 sm:$0xff]   ;;  %v3367_v1 = vld [vmem:[%s3967_s1 + $0x10] ss:$8 sps:$4 sm:$0xff]   ;;  %s434_s24 = scalar_select %p433_p10, %s3331_s29, 1  ;;  %v3233_v4 = vmov 0   ;;  %v826_v35 = vlaneseq }
  0x16   : > { %559 = vmatprep.subr.bf16.mxu1 %v3362_v0  ;;  %v3020_v2 = vld [vmem:[%s3967_s1 + $0x34] ss:$8 sps:$4 sm:$0xff]   ;;  %v3022_v3 = vld [vmem:[%s3967_s1 + $0x30] ss:$8 sps:$4 sm:$0xff]   ;;  %579 = vmatprep.mubr.bf16.mxu1 %v3233_v4  ;;  %v3382_v5 = vld [vmem:[%s3967_s1 + $0x4] ss:$8 sps:$4 sm:$0xff]  }
  0x17   : > { %560 = vmatpush1.bf16.msra.mxu1 %v3367_v1  ;;  %v3387_v6 = vld [vmem:[%s3967_s1] ss:$8 sps:$4 sm:$0xff]   ;;  %513 = vmatprep.mubr.bf16.mxu0 %v3233_v4  ;;  %s2788_s30 = sshll.u32 %s434_s24, 3  ;;  %v3026_v7 = vld [vmem:[%s3967_s1 + $0x24] ss:$8 sps:$4 sm:$0xff]   ;;  %vm477_vm0 = vcmask 261120  }
  0x18   : > { %493 = vmatprep.subr.bf16.mxu0 %v3020_v2  ;;  %s437_s14 = scalar_lea.vmem %s3966_s0, %s2788_s30  ;;  %561 = vmatprep.subr.bf16.mxu1 %v3382_v5  ;;  %v3028_v8 = vld [vmem:[%s3967_s1 + $0x20] ss:$8 sps:$4 sm:$0xff]   ;;  %v3404_v10 = vld [vmem:[%s3967_s1 + $0x70] ss:$8 sps:$4 sm:$0xff]   ;;  %v3031_v11 = vld [vmem:[%s3967_s1 + $0x74] ss:$8 sps:$4 sm:$0xff]  }
  0x19   : > { %494 = vmatpush1.bf16.msra.mxu0 %v3022_v3  ;;  %v3016_v9 = vld [vmem:[%s437_s14] sm:$0xff]   ;;  %s3234_s30 = smov 96   ;;  %v3034_v15 = vld [vmem:[%s3967_s1 + $0x54] ss:$8 sps:$4 sm:$0xff]   ;;  %v3032_v20 = vld [vmem:[%s3967_s1 + $0x50] ss:$8 sps:$4 sm:$0xff]  }
  0x1a   : > { %495 = vmatprep.subr.bf16.mxu0 %v3026_v7  ;;  %455 = vrot.lane.b32.xlu0 %v3016_v9, %s3234_s30  ;;  %v595_v12 = vshrl.u32 %v3016_v9, 16  ;;  %v597_v13 = vshll.u32 %v3016_v9, 16  ;;  %v3409_v14 = vrot.slane %v3016_v9, 1  ;;  %v3037_v17 = vld [vmem:[%s3967_s1 + $0x64] ss:$8 sps:$4 sm:$0xff]   ;;  %v827_v40 = vshrl.u32 %v826_v35, 7 }
  0x1b   : > { %562 = vmatpush1.bf16.msra.mxu1 %v3387_v6  ;;  %v3035_v18 = vld [vmem:[%s3967_s1 + $0x60] ss:$8 sps:$4 sm:$0xff]   ;;  %v3040_v21 = vld [vmem:[%s3967_s1 + $0x44] ss:$8 sps:$4 sm:$0xff]   ;;  %v3043_v24 = vld [vmem:[%s3967_s1 + $0x94] ss:$8 sps:$4 sm:$0xff]  }
  0x1c   : > { %713 = vmatprep.subr.bf16.mxu1 %v3031_v11  ;;  %v599_v16 = vrot.slane %v597_v13, 1  ;;  %1059 = vrot.lane.b32.xlu1 %v3409_v14, %s3234_s30  ;;  %v3038_v23 = vld [vmem:[%s3967_s1 + $0x40] ss:$8 sps:$4 sm:$0xff]   ;;  %v3041_v26 = vld [vmem:[%s3967_s1 + $0x90] ss:$8 sps:$4 sm:$0xff]   ;;  %v3470_v48 = vsub.s32 0, %v827_v40 }
  0x1d   : > { %496 = vmatpush1.bf16.msra.mxu0 %v3028_v8  ;;  %v3046_v27 = vld [vmem:[%s3967_s1 + $0x84] ss:$8 sps:$4 sm:$0xff]   ;;  %v3044_v28 = vld [vmem:[%s3967_s1 + $0x80] ss:$8 sps:$4 sm:$0xff]   ;;  %v3475_v54 = vsub.s32 1, %v827_v40  ;;  %vm1233_vm1 = vcmask 1041408  }
  0x1e   : > { %2552 = vmatmul.mubr.msk.bf16.vlgmr.msra.gmra.mxu1 %vm477_vm0, %v3016_v9  ;;  %636 = vmatprep.subr.bf16.mxu0 %v3034_v15  ;;  %v600_v19 = vor.u32 %v599_v16, %v595_v12  ;;  %v824_v51 = vld [vmem:[%s3968_s2] sm:$0x3]  ;;  %v3056_v40 = vld [vmem:[%s3970_s4 + $0x34] ss:$8 sps:$4 sm:$0xff]   ;;  %vm872_vm2 = vcmask 359424   ;;  %vm1229_vm3 = vcmask 687104  }
  0x1f   : > { %714 = vmatpush1.bf16.msra.mxu1 %v3404_v10  ;;  %733 = vmatprep.mubr.bf16.mxu1 %v3233_v4  ;;  %v840_v58 = vld [vmem:[%s3969_s3] sm:$0x3]  ;;  %v3481_v61 = vrot.slane %v824_v51, %v3470_v48  ;;  %vm3237_vm4 = vmmov 0   ;;  %vm1812_vm5 = vcmask 392192   ;;  %vm1877_vm6 = vcmask 654336   ;;  %s3175_s24 = sshll.u32 %s3239_s20, 4  ;;  %s3176_s24 = int_to_ptr.vmem [resolvable:$false] %s3175_s24 }
  0x20   : > { %715 = vmatprep.subr.bf16.mxu1 %v3037_v17  ;;  %676 = vrot.lane.b32.xlu0 %v600_v19, %s3234_s30  ;;  %v3049_v35 = vld [vmem:[%s3970_s4 + $0x40] ss:$8 sps:$4 sm:$0xff]   ;;  %vm2325_vm7 = vcmask 1043456   ;;  %vm2321_vm8 = vcmask 982016   ;;  %vm2462_vm9 = vcmask 73728   ;;  %s3177_s22 = scalar_lea.vmem %s3176_s24, 32 }
  0x23   : > { %716 = vmatpush1.bf16.msra.mxu1 %v3035_v18 }
  0x24   : > { %891 = vmatprep.subr.bf16.mxu1 %v3020_v2  ;;  %v3484_v2 = vrot.slane %v840_v58, %v3470_v48 }
  0x8c   : > { %v456_v22 = vpop.permute.xlu0 %455 }
  0x8d   : > { %2547 = vmatmul.mubr.msk.bf16.vlgmr.msra.gmra.mxu0 %vm477_vm0, %v456_v22 }
  0x8e   : > { %637 = vmatpush1.bf16.msra.mxu0 %v3032_v20  ;;  %656 = vmatprep.mubr.bf16.mxu0 %v3233_v4  ;;  %v1060_v29 = vpop.permute.xlu1 %1059 }
  0x8f   : > { %638 = vmatprep.subr.bf16.mxu0 %v3040_v21 }
  0x92   : > { %639 = vmatpush1.bf16.msra.mxu0 %v3038_v23  ;;  %v677_v25 = vpop.permute.xlu0 %676 }
  0x93   : > { %2570 = vmatmul.mubr.msk.bf16.vlgmr.msra.gmra.mxu1 %vm477_vm0, %v677_v25  ;;  %789 = vmatprep.subr.bf16.mxu0 %v3043_v24 }
  0x94   : > { %892 = vmatpush1.bf16.msra.mxu1 %v3022_v3  ;;  %911 = vmatprep.mubr.bf16.mxu1 %v3233_v4 }
  0x95   : > { %2561 = vmatmul.mubr.msk.bf16.vlgmr.msra.gmra.mxu0 %vm477_vm0, %v600_v19  ;;  %893 = vmatprep.subr.bf16.mxu1 %v3026_v7 }
  0x96   : > { %790 = vmatpush1.bf16.msra.mxu0 %v3041_v26  ;;  %809 = vmatprep.mubr.bf16.mxu0 %v3233_v4 }
  0x97   : > { %791 = vmatprep.subr.bf16.mxu0 %v3046_v27 }
  0x98   : > { %894 = vmatpush1.bf16.msra.mxu1 %v3028_v8 }
  0x99   : > { %977 = vmatprep.subr.bf16.mxu1 %v3034_v15  ;;  %v1154_v15 = vld [vmem:[%s3970_s4 + $0x50] sm:$0x33] }
  0x9a   : > { %792 = vmatpush1.bf16.msra.mxu0 %v3044_v28 }
  0x9b   : > { %2580 = vmatmul.mubr.msk.bf16.vlgmr.msra.gmra.mxu1 %vm477_vm0, %v600_v19  ;;  %934 = vmatprep.subr.bf16.mxu0 %v3362_v0  ;;  %v2621_v19 = vcombine.high %v1154_v15, %v1154_v15 }
  0x9c   : > { %978 = vmatpush1.bf16.msra.mxu1 %v3032_v20  ;;  %997 = vmatprep.mubr.bf16.mxu1 %v3233_v4 }
  0x9d   : > { %2579 = vmatmul.mubr.msk.bf16.vlgmr.msra.gmra.mxu0 %vm477_vm0, %v3409_v14  ;;  %979 = vmatprep.subr.bf16.mxu1 %v3040_v21 }
  0x9e   : > { %935 = vmatpush1.bf16.msra.mxu0 %v3367_v1  ;;  %954 = vmatprep.mubr.bf16.mxu0 %v3233_v4 }
  0x9f   : > { %936 = vmatprep.subr.bf16.mxu0 %v3382_v5  ;;  %v3487_v5 = vrot.slane %v824_v51, %v3475_v54 }
  0xa0   : > { %980 = vmatpush1.bf16.msra.mxu1 %v3038_v23 }
  0xa1   : > { %1076 = vmatprep.subr.bf16.mxu1 %v3043_v24 }
  0xa2   : > { %937 = vmatpush1.bf16.msra.mxu0 %v3387_v6 }
  0xa3   : > { %2582 = vmatmul.mubr.msk.bf16.vlgmr.msra.gmra.mxu1 %vm477_vm0, %v677_v25  ;;  %1024 = vmatprep.subr.bf16.mxu0 %v3031_v11 }
  0xa4   : > { %1077 = vmatpush1.bf16.msra.mxu1 %v3041_v26  ;;  %1096 = vmatprep.mubr.bf16.mxu1 %v3233_v4  ;;  %v3051_v26 = vld [vmem:[%s3970_s4 + $0x44] ss:$8 sps:$4 sm:$0xff]  }
  0xa5   : > { %2581 = vmatmul.mubr.msk.bf16.vlgmr.msra.gmra.mxu0 %vm477_vm0, %v456_v22  ;;  %1078 = vmatprep.subr.bf16.mxu1 %v3046_v27  ;;  %v2620_v22 = vcombine.low %v1154_v15, %v1154_v15 }
  0xa6   : > { %1025 = vmatpush1.bf16.msra.mxu0 %v3404_v10  ;;  %1044 = vmatprep.mubr.bf16.mxu0 %v3233_v4  ;;  %v3491_v10 = vrot.slane %v840_v58, %v3475_v54 }
  0xa7   : > { %1026 = vmatprep.subr.bf16.mxu0 %v3037_v17 }
  0xa8   : > { %1079 = vmatpush1.bf16.msra.mxu1 %v3044_v28 }
  0xa9   : > { %2622 = vmatprep.subr.msk.bf16.mxu1 %vm1233_vm1, %v2621_v19 }
  0xaa   : > { %1027 = vmatpush1.bf16.msra.mxu0 %v3035_v18 }
  0xab   : > { %2584 = vmatmul.mubr.msk.bf16.vlgmr.msra.gmra.mxu1 %vm477_vm0, %v1060_v29  ;;  %v1341_v29 = vsel %vm1233_vm1, %v2620_v22, 0 }
  0xac   : > { %1378 = vmatprep.mubr.bf16.mxu1 %v3233_v4  ;;  %1351 = vmatpush1.bf16.msra.mxu1 %v1341_v29 }
  0xad   : > { %2583 = vmatmul.mubr.msk.bf16.vlgmr.msra.gmra.mxu0 %vm477_vm0, %v3409_v14  ;;  %1352 = vmatprep.subr.bf16.mxu1 %v3051_v26 }
  0xae   : > { %1272 = vmatprep.mubr.bf16.mxu0 %v3233_v4 }
  0xb0   : > { %1353 = vmatpush1.bf16.msra.mxu1 %v3049_v35 }
  0xb1   : > { %1354 = vmatprep.subr.bf16.mxu1 %v3056_v40 }
  0xde   : > { %v581_v30 = vpop.f32.mrf.mxu1 }
  0xe0   : > { %v583_v31 = vpop.f32.mrf.mxu1 }
  0xe2   : > { %v585_v33 = vpop.f32.mrf.mxu1 }
  0xe4   : > { %v587_v36 = vpop.f32.mrf.mxu1 }
 0x14d   : > { %v515_v32 = vpop.f32.mrf.mxu0 }
 0x14e   : > { %v582_v43 = vadd.f32 %v581_v30, %v515_v32  ;;  %v2595_v30 = vld [vmem:[%s3970_s4 + $0xa8] sm:$0x33] }
 0x14f   : > { %v517_v34 = vpop.f32.mrf.mxu0 }
 0x150   : > { %v584_v46 = vadd.f32 %v583_v31, %v517_v34 }
 0x151   : > { %v519_v37 = vpop.f32.mrf.mxu0 }
 0x152   : > { %v586_v52 = vadd.f32 %v585_v33, %v519_v37 }
 0x153   : > { %v521_v38 = vpop.f32.mrf.mxu0  ;;  %v735_v39 = vpop.f32.mrf.mxu1 }
 0x154   : > { %v588_v55 = vadd.f32 %v587_v36, %v521_v38  ;;  %v2607_v38 = vcombine.high %v2595_v30, %v2595_v30 }
 0x155   : > { %v658_v41 = vpop.f32.mrf.mxu0  ;;  %v737_v42 = vpop.f32.mrf.mxu1 }
 0x156   : > { %v667_v47 = vadd.f32 %v658_v41, %v582_v43  ;;  %2608 = vmatprep.subr.msk.bf16.mxu0 %vm1233_vm1, %v2607_v38 }
 0x157   : > { %v660_v44 = vpop.f32.mrf.mxu0  ;;  %v739_v45 = vpop.f32.mrf.mxu1 }
 0x158   : > { %v668_v53 = vadd.f32 %v660_v44, %v584_v46  ;;  %v744_v60 = vadd.f32 %v735_v39, %v667_v47  ;;  %v2606_v39 = vcombine.low %v2595_v30, %v2595_v30  ;;  %v3059_v44 = vld [vmem:[%s3970_s4 + $0x9c] ss:$8 sps:$4 sm:$0xff]   ;;  %v3069_v30 = vld [vmem:[%s3970_s4 + $0x78] ss:$8 sps:$4 sm:$0xff]  }
 0x159   : > { %v662_v49 = vpop.f32.mrf.mxu0  ;;  %v741_v50 = vpop.f32.mrf.mxu1 }
 0x15a   : > { %v669_v59 = vadd.f32 %v662_v49, %v586_v52  ;;  %v745_v3 = vadd.f32 %v737_v42, %v668_v53  ;;  %v1235_v47 = vsel %vm1233_vm1, %v2606_v39, 0  ;;  %v3054_v52 = vld [vmem:[%s3970_s4 + $0x30] ss:$8 sps:$4 sm:$0xff]  }
 0x15b   : > { %v664_v56 = vpop.f32.mrf.mxu0  ;;  %v913_v57 = vpop.f32.mrf.mxu1  ;;  %1245 = vmatpush1.bf16.msra.mxu0 %v1235_v47  ;;  %1355 = vmatpush1.bf16.msra.mxu1 %v3054_v52  ;;  %v3082_v47 = vld [vmem:[%s3970_s4 + $0x5c] ss:$8 sps:$4 sm:$0xff]  }
 0x15c   : > { %v670_v62 = vadd.f32 %v664_v56, %v588_v55  ;;  %v746_v11 = vadd.f32 %v739_v45, %v669_v59  ;;  %v3057_v56 = vld [vmem:[%s3970_s4 + $0x98] ss:$8 sps:$4 sm:$0xff]   ;;  %1246 = vmatprep.subr.bf16.mxu0 %v3059_v44 }
 0x15d   : > { %v811_v63 = vpop.f32.mrf.mxu0  ;;  %v915_v0 = vpop.f32.mrf.mxu1 }
 0x15e   : > { %v820_v1 = vadd.f32 %v811_v63, %v744_v60  ;;  %v747_v14 = vadd.f32 %v741_v50, %v670_v62 }
 0x15f   : > { %v813_v6 = vpop.f32.mrf.mxu0  ;;  %v917_v7 = vpop.f32.mrf.mxu1  ;;  %1247 = vmatpush1.bf16.msra.mxu0 %v3057_v56 }
 0x160   : > { %v836_v8 = vmul.f32 %v3481_v61, %v820_v1  ;;  %v821_v9 = vadd.f32 %v813_v6, %v745_v3  ;;  %v3062_v3 = vld [vmem:[%s3970_s4 + $0x24] ss:$8 sps:$4 sm:$0xff]  }
 0x161   : > { %v815_v12 = vpop.f32.mrf.mxu0  ;;  %v919_v13 = vpop.f32.mrf.mxu1  ;;  %1356 = vmatprep.subr.bf16.mxu1 %v3062_v3 }
 0x162   : > { %v3497_v16 = vadd.f32 %v3484_v2, %v836_v8  ;;  %v837_v17 = vmul.f32 %v3487_v5, %v821_v9  ;;  %v822_v18 = vadd.f32 %v815_v12, %v746_v11  ;;  %v3065_v12 = vld [vmem:[%s3970_s4 + $0x8c] ss:$8 sps:$4 sm:$0xff]  }
 0x163   : > { %v817_v20 = vpop.f32.mrf.mxu0  ;;  %v999_v21 = vpop.f32.mrf.mxu1  ;;  %1248 = vmatprep.subr.bf16.mxu0 %v3065_v12 }
 0x164   : > { %v853_v23 = vadd.f32 %v3491_v10, %v837_v17  ;;  %v838_v24 = vmul.f32 %v3481_v61, %v822_v18  ;;  %v823_v25 = vadd.f32 %v817_v20, %v747_v14  ;;  %v856_v31 = vmax.f32 %v3497_v16, 0.0  ;;  %v3063_v17 = vld [vmem:[%s3970_s4 + $0x88] ss:$8 sps:$4 sm:$0xff]  }
 0x165   : > { %v956_v27 = vpop.f32.mrf.mxu0  ;;  %v1001_v28 = vpop.f32.mrf.mxu1  ;;  %1249 = vmatpush1.bf16.msra.mxu0 %v3063_v17 }
 0x166   : > { %v857_v32 = vmax.f32 %v853_v23, 0.0  ;;  %v3512_v33 = vadd.f32 %v3484_v2, %v838_v24  ;;  %v839_v34 = vmul.f32 %v3487_v5, %v823_v25  ;;  %v957_v42 = vadd.f32 %v956_v27, %v913_v57  ;;  %v3066_v23 = vld [vmem:[%s3970_s4 + $0x10] ss:$8 sps:$4 sm:$0xff]  }
 0x167   : > { %v958_v36 = vpop.f32.mrf.mxu0  ;;  %v1003_v37 = vpop.f32.mrf.mxu1 }
 0x168   : > { %v855_v41 = vadd.f32 %v3491_v10, %v839_v34  ;;  %v2986_v43 = vpack.i.bf16 %v857_v32, %v856_v31  ;;  %v858_v49 = vmax.f32 %v3512_v33, 0.0  ;;  %v959_v51 = vadd.f32 %v958_v36, %v915_v0  ;;  %v3074_v36 = vld [vmem:[%s3970_s4 + $0x4] ss:$8 sps:$4 sm:$0xff]   ;;  %v3083_v33 = vld [vmem:[%s3970_s4 + $0x148] ss:$8 sps:$4 sm:$0xff]  }
 0x169   : > { %v960_v45 = vpop.f32.mrf.mxu0  ;;  %v1005_v46 = vpop.f32.mrf.mxu1  ;;  %v1008_v58 = vadd.f32 %v999_v21, %v957_v42  ;;  %v3068_v21 = vld [vmem:[%s3970_s4 + $0x14] ss:$8 sps:$4 sm:$0xff]   ;;  %v3075_v42 = vld [vmem:[%s3970_s4 + $0x68] ss:$8 sps:$4 sm:$0xff]  }
 0x16a   : > { %v859_v50 = vmax.f32 %v855_v41, 0.0  ;;  %2987 = vrot.lane.b32.xlu1 %v2986_v43, %s3235_s16  ;;  %v961_v57 = vadd.f32 %v960_v45, %v917_v7  ;;  %v1009_v1 = vadd.f32 %v1001_v28, %v959_v51  ;;  %v3060_v7 = vld [vmem:[%s3970_s4 + $0x20] ss:$8 sps:$4 sm:$0xff]   ;;  %v3071_v28 = vld [vmem:[%s3970_s4 + $0x7c] ss:$8 sps:$4 sm:$0xff]  }
 0x16b   : > { %v962_v53 = vpop.f32.mrf.mxu0  ;;  %v1098_v55 = vpop.f32.mrf.mxu1  ;;  %1357 = vmatpush1.bf16.msra.mxu1 %v3060_v7  ;;  %1250 = vmatprep.subr.bf16.mxu0 %v3071_v28  ;;  %v3077_v41 = vld [vmem:[%s3970_s4 + $0x6c] ss:$8 sps:$4 sm:$0xff]   ;;  %v2659_v43 = vld [vmem:[%s3970_s4 + $0x158] sm:$0x33] }
 0x16c   : > { %v2991_v59 = vpack.i.bf16 %v859_v50, %v858_v49  ;;  %v963_v60 = vadd.f32 %v962_v53, %v919_v13  ;;  %v1010_v11 = vadd.f32 %v1003_v37, %v961_v57  ;;  %1358 = vmatprep.subr.bf16.mxu1 %v3068_v21  ;;  %1251 = vmatpush1.bf16.msra.mxu0 %v3069_v30  ;;  %v3072_v37 = vld [vmem:[%s3970_s4] ss:$8 sps:$4 sm:$0xff]   ;;  %v3085_v21 = vld [vmem:[%s3970_s4 + $0x14c] ss:$8 sps:$4 sm:$0xff]  }
 0x16d   : > { %v1046_v62 = vpop.f32.mrf.mxu0  ;;  %v1100_v63 = vpop.f32.mrf.mxu1  ;;  %1252 = vmatprep.subr.bf16.mxu0 %v3077_v41  ;;  %v2671_v45 = vcombine.high %v2659_v43, %v2659_v43  ;;  %v3080_v50 = vld [vmem:[%s3970_s4 + $0x58] ss:$8 sps:$4 sm:$0xff]   ;;  %v3096_v28 = vld [vmem:[%s3970_s4 + $0x12c] ss:$8 sps:$4 sm:$0xff]  }
 0x16e   : > { %v1055_v0 = vadd.f32 %v1046_v62, %v1008_v58  ;;  %2992 = vrot.lane.b32.xlu0 %v2991_v59, %s3235_s16  ;;  %v1011_v15 = vadd.f32 %v1005_v46, %v963_v60  ;;  %v3099_v30 = vld [vmem:[%s3970_s4 + $0xe4] ss:$8 sps:$4 sm:$0xff]  }
 0x16f   : > { %v1048_v6 = vpop.f32.mrf.mxu0  ;;  %v1102_v13 = vpop.f32.mrf.mxu1  ;;  %1359 = vmatpush1.bf16.msra.mxu1 %v3066_v23  ;;  %v3090_v23 = vld [vmem:[%s3970_s4 + $0x13c] ss:$8 sps:$4 sm:$0xff]  }
 0x170   : > { %v1107_v8 = vadd.f32 %v1098_v55, %v1055_v0  ;;  %v1056_v9 = vadd.f32 %v1048_v6, %v1009_v1  ;;  %1360 = vmatprep.subr.bf16.mxu1 %v3074_v36  ;;  %1253 = vmatpush1.bf16.msra.mxu0 %v3075_v42  ;;  %v3105_v36 = vld [vmem:[%s3970_s4 + $0xd4] ss:$8 sps:$4 sm:$0xff]  }
 0x171   : > { %v1050_v14 = vpop.f32.mrf.mxu0  ;;  %v1104_v29 = vpop.f32.mrf.mxu1  ;;  %1254 = vmatprep.subr.bf16.mxu0 %v3082_v47 }
 0x172   : > { %v1111_v18 = vmul.f32 %v1107_v8, %v3481_v61  ;;  %v1108_v19 = vadd.f32 %v1100_v63, %v1056_v9  ;;  %v1057_v20 = vadd.f32 %v1050_v14, %v1010_v11 }
 0x173   : > { %v1052_v22 = vpop.f32.mrf.mxu0  ;;  %1361 = vmatpush1.bf16.msra.mxu1 %v3072_v37  ;;  %v3100_v37 = vld [vmem:[%s3970_s4 + $0x118] ss:$8 sps:$4 sm:$0xff]  }
 0x174   : > { %v1112_v24 = vmul.f32 %v1108_v19, %v3487_v5  ;;  %v1109_v25 = vadd.f32 %v1102_v13, %v1057_v20  ;;  %v1058_v26 = vadd.f32 %v1052_v22, %v1011_v15  ;;  %v1115_v27 = vadd.f32 %v1111_v18, %v3484_v2  ;;  %2672 = vmatprep.subr.msk.bf16.mxu1 %vm1233_vm1, %v2671_v45 }
 0x175   : > { %1255 = vmatpush1.bf16.msra.mxu0 %v3080_v50  ;;  %v2670_v15 = vcombine.low %v2659_v43, %v2659_v43  ;;  %v3109_v43 = vld [vmem:[%s3970_s4 + $0xc0] ss:$8 sps:$4 sm:$0xff]  }
 0x176   : > { %v1113_v32 = vmul.f32 %v1109_v25, %v3481_v61  ;;  %v1110_v34 = vadd.f32 %v1104_v29, %v1058_v26  ;;  %v1116_v35 = vadd.f32 %v1112_v24, %v3491_v10  ;;  %v1119_v39 = vmax.f32 %v1115_v27, 0.0  ;;  %v3093_v26 = vld [vmem:[%s3970_s4 + $0xf4] ss:$8 sps:$4 sm:$0xff]   ;;  %v3088_v27 = vld [vmem:[%s3970_s4 + $0x138] ss:$8 sps:$4 sm:$0xff]  }
 0x177   : > { %v1588_v20 = vsel %vm1233_vm1, %v2670_v15, 0  ;;  %v3091_v29 = vld [vmem:[%s3970_s4 + $0xf0] ss:$8 sps:$4 sm:$0xff]  }
 0x178   : > { %v1114_v38 = vmul.f32 %v1110_v34, %v3487_v5  ;;  %v1120_v40 = vmax.f32 %v1116_v35, 0.0  ;;  %v1117_v61 = vadd.f32 %v1113_v32, %v3484_v2  ;;  %v3094_v32 = vld [vmem:[%s3970_s4 + $0x128] ss:$8 sps:$4 sm:$0xff]   ;;  %v3102_v34 = vld [vmem:[%s3970_s4 + $0x11c] ss:$8 sps:$4 sm:$0xff]  }
 0x179   : > { %v3097_v35 = vld [vmem:[%s3970_s4 + $0xe0] ss:$8 sps:$4 sm:$0xff]  }
 0x17a   : > { %v2996_v44 = vpack.i.bf16 %v1120_v40, %v1119_v39  ;;  %v1118_v5 = vadd.f32 %v1114_v38, %v3491_v10  ;;  %v1121_v2 = vmax.f32 %v1117_v61, 0.0  ;;  %v2634_v10 = vld [vmem:[%s3970_s4 + $0x100] sm:$0x33]  ;;  %v3108_v38 = vld [vmem:[%s3970_s4 + $0x10c] ss:$8 sps:$4 sm:$0xff]  }
 0x17b   : > { %v2646_v52 = vcombine.high %v2634_v10, %v2634_v10  ;;  %v3111_v40 = vld [vmem:[%s3970_s4 + $0xc4] ss:$8 sps:$4 sm:$0xff]   ;;  %v3106_v61 = vld [vmem:[%s3970_s4 + $0x108] ss:$8 sps:$4 sm:$0xff]  }
 0x17c   : > { %2997 = vrot.lane.b32.xlu1 %v2996_v44, %s3235_s16  ;;  %v1122_v46 = vmax.f32 %v1118_v5, 0.0  ;;  %v3114_v44 = vld [vmem:[%s3970_s4 + $0xb4] ss:$8 sps:$4 sm:$0xff]  }
 0x17d   : > { %2647 = vmatprep.subr.msk.bf16.mxu0 %vm1233_vm1, %v2646_v52  ;;  %v2684_v5 = vld [vmem:[%s3970_s4 + $0x1b0] sm:$0x33]  ;;  %v3117_v52 = vld [vmem:[%s3970_s4 + $0x1a0] ss:$8 sps:$4 sm:$0xff]  }
 0x17e   : > { %v3001_v51 = vpack.i.bf16 %v1122_v46, %v1121_v2  ;;  %v2696_v46 = vcombine.high %v2684_v5, %v2684_v5  ;;  %v2695_v47 = vcombine.low %v2684_v5, %v2684_v5 }
 0x180   : > { %3002 = vrot.lane.b32.xlu0 %v3001_v51, %s3235_s16  ;;  %v1712_v51 = vsel %vm1233_vm1, %v2695_v47, 0  ;;  %s2477_s16 = sshll.u32 %s432_s27, 4  ;;  %s3927_s16 = int_to_ptr.vmem [resolvable:$true] %s2477_s16 }
 0x181   : > { %p3178_p0 = scmp.lt.s32.totalorder %s3927_s16, %s3176_s24 }
 0x1dc   : > { %v2988_v53 = vpop.permute.xlu1 %2987 }
 0x1dd   : > { %v2990_v56 = vunpack.i.h.bf16 %v2988_v53  ;;  %v2989_v57 = vunpack.i.l.bf16 %v2988_v53  ;;  %v3122_v53 = vld [vmem:[%s3970_s4 + $0x194] ss:$8 sps:$4 sm:$0xff]  }
 0x1df   : > { %v873_v3 = vsel %vm872_vm2, %v2989_v57, %v2990_v56  ;;  %v3125_v56 = vld [vmem:[%s3970_s4 + $0x184] ss:$8 sps:$4 sm:$0xff]   ;;  %v3128_v57 = vld [vmem:[%s3970_s4 + $0x174] ss:$8 sps:$4 sm:$0xff]  }
 0x1e0   : > { %v2993_v55 = vpop.permute.xlu0 %2992  ;;  %v877_v12 = vmax.f32 %v856_v31, %v873_v3  ;;  %v2645_v31 = vcombine.low %v2634_v10, %v2634_v10  ;;  %v3119_v10 = vld [vmem:[%s3970_s4 + $0x1a4] ss:$8 sps:$4 sm:$0xff]  }
 0x1e1   : > { %v2995_v59 = vunpack.i.h.bf16 %v2993_v55  ;;  %v2994_v60 = vunpack.i.l.bf16 %v2993_v55  ;;  %v3120_v55 = vld [vmem:[%s3970_s4 + $0x190] ss:$8 sps:$4 sm:$0xff]   ;;  %v3134_v3 = vld [vmem:[%s3973_s7 + $0x40] sm:$0xff]  }
 0x1e2   : > { %v1462_v25 = vsel %vm1233_vm1, %v2645_v31, 0 }
 0x1e3   : > { %v874_v6 = vsel %vm872_vm2, %v2994_v60, %v2995_v59  ;;  %v3131_v59 = vld [vmem:[%s3970_s4 + $0x164] ss:$8 sps:$4 sm:$0xff]   ;;  %v3129_v60 = vld [vmem:[%s3970_s4 + $0x160] ss:$8 sps:$4 sm:$0xff]  }
 0x1e4   : > { %v878_v13 = vmax.f32 %v858_v49, %v874_v6  ;;  %v3135_v6 = vld [vmem:[%s3973_s7 + $0x68] sm:$0xff]  }
 0x1ee   : > { %v2998_v58 = vpop.permute.xlu1 %2997 }
 0x1ef   : > { %v3000_v62 = vunpack.i.h.bf16 %v2998_v58  ;;  %v2999_v63 = vunpack.i.l.bf16 %v2998_v58  ;;  %v3126_v58 = vld [vmem:[%s3970_s4 + $0x170] ss:$8 sps:$4 sm:$0xff]  }
 0x1f1   : > { %v1135_v0 = vsel %vm872_vm2, %v2999_v63, %v3000_v62  ;;  %v3132_v63 = vld [vmem:[%s3973_s7 + $0x48] sm:$0xff]  }
 0x1f2   : > { %v3003_v1 = vpop.permute.xlu0 %3002  ;;  %v1139_v9 = vmax.f32 %v1119_v39, %v1135_v0  ;;  %v3103_v39 = vld [vmem:[%s3970_s4 + $0xd0] ss:$8 sps:$4 sm:$0xff]  }
 0x1f3   : > { %v3005_v7 = vunpack.i.h.bf16 %v3003_v1  ;;  %v3004_v8 = vunpack.i.l.bf16 %v3003_v1  ;;  %v3133_v0 = vld [vmem:[%s3973_s7 + $0x70] sm:$0xff]   ;;  %v3236_v1 = vmov 0.0  }
 0x1f4   : > { %v1141_v17 = vmax.f32 %v877_v12, %v1139_v9 }
 0x1f5   : > { %v1136_v11 = vsel %vm872_vm2, %v3004_v8, %v3005_v7 }
 0x1f6   : > { %v1140_v14 = vmax.f32 %v1121_v2, %v1136_v11  ;;  %v3112_v2 = vld [vmem:[%s3970_s4 + $0xb0] ss:$8 sps:$4 sm:$0xff]  }
 0x1f8   : > { %v1142_v18 = vmax.f32 %v878_v13, %v1140_v14 }
 0x1fa   : > { %v3604_v19 = vpack.c.bf16 %v1142_v18, %v1141_v17 }
 0x1fc   : > { %2623 = vmatmul.mubr.msk.bf16.vlgmr.msra.gmra.mxu1 %vm1229_vm3, %v3604_v19  ;;  %v1170_v16 = vshll.u32 %v3604_v19, 16  ;;  %v1168_v49 = vshrl.u32 %v3604_v19, 16  ;;  %v1402_v50 = vrot.slane %v3604_v19, 1  ;;  %v1652_v62 = vrot.slane %v3604_v19, 2 }
 0x1fd   : > { %1598 = vmatpush1.bf16.msra.mxu1 %v1588_v20  ;;  %1625 = vmatprep.mubr.bf16.mxu1 %v3233_v4 }
 0x1fe   : > { %1599 = vmatprep.subr.bf16.mxu1 %v3085_v21  ;;  %v1172_v22 = vrot.slane %v1170_v16, 1  ;;  %v1526_v41 = vrot.slane %v1168_v49, 1  ;;  %v1527_v42 = vrot.slane %v1170_v16, 2 }
 0x200   : > { %v1173_v24 = vor.u32 %v1172_v22, %v1168_v49  ;;  %v1528_v45 = vor.u32 %v1527_v42, %v1526_v41  ;;  %v1764_v49 = vld [vmem:[%s3971_s5] sm:$0x3] }
 0x201   : > { %1600 = vmatpush1.bf16.msra.mxu1 %v3083_v33 }
 0x202   : > { %2609 = vmatmul.mubr.msk.bf16.vlgmr.msra.gmra.mxu0 %vm1229_vm3, %v1173_v24  ;;  %1601 = vmatprep.subr.bf16.mxu1 %v3090_v23 }
 0x203   : > { %1472 = vmatpush1.bf16.msra.mxu0 %v1462_v25  ;;  %1499 = vmatprep.mubr.bf16.mxu0 %v3233_v4  ;;  %v1780_v25 = vld [vmem:[%s3972_s6] sm:$0x3] }
 0x204   : > { %1473 = vmatprep.subr.bf16.mxu0 %v3093_v26 }
 0x205   : > { %1602 = vmatpush1.bf16.msra.mxu1 %v3088_v27 }
 0x206   : > { %1603 = vmatprep.subr.bf16.mxu1 %v3096_v28 }
 0x207   : > { %1474 = vmatpush1.bf16.msra.mxu0 %v3091_v29 }
 0x208   : > { %1475 = vmatprep.subr.bf16.mxu0 %v3099_v30  ;;  %v1769_v30 = vrot.slane %v1764_v49, %v3470_v48 }
 0x209   : > { %1604 = vmatpush1.bf16.msra.mxu1 %v3094_v32  ;;  %v3136_v32 = vld [vmem:[%s3973_s7 + $0x38] sm:$0xff]  }
 0x20a   : > { %1605 = vmatprep.subr.bf16.mxu1 %v3102_v34  ;;  %v3137_v34 = vld [vmem:[%s3973_s7 + $0x60] sm:$0xff]  }
 0x20b   : > { %1476 = vmatpush1.bf16.msra.mxu0 %v3097_v35 }
 0x20c   : > { %1477 = vmatprep.subr.bf16.mxu0 %v3105_v36 }
 0x20d   : > { %1606 = vmatpush1.bf16.msra.mxu1 %v3100_v37  ;;  %v1785_v37 = vrot.slane %v1780_v25, %v3470_v48  ;;  %v3138_v48 = vld [vmem:[%s3973_s7 + $0x30] sm:$0xff]  }
 0x20e   : > { %1607 = vmatprep.subr.bf16.mxu1 %v3108_v38 }
 0x20f   : > { %1478 = vmatpush1.bf16.msra.mxu0 %v3103_v39 }
 0x210   : > { %1479 = vmatprep.subr.bf16.mxu0 %v3111_v40  ;;  %v1773_v40 = vrot.slane %v1764_v49, %v3475_v54 }
 0x211   : > { %1608 = vmatpush1.bf16.msra.mxu1 %v3106_v61 }
 0x212   : > { %2835 = vmatprep.subr.bf16.mxu1 %v3236_v1 }
 0x213   : > { %1480 = vmatpush1.bf16.msra.mxu0 %v3109_v43 }
 0x214   : > { %2673 = vmatmul.mubr.msk.bf16.vlgmr.msra.gmra.mxu1 %vm1229_vm3, %v1528_v45  ;;  %1481 = vmatprep.subr.bf16.mxu0 %v3114_v44  ;;  %v1789_v44 = vrot.slane %v1780_v25, %v3475_v54  ;;  %v3139_v45 = vld [vmem:[%s3973_s7 + $0x58] sm:$0xff]   ;;  %v3148_v25 = vld [vmem:[%s3973_s7 + $0x8] sm:$0xff]  }
 0x215   : > { %2836 = vmatpush3.bf16.msra.mxu1 %v3132_v63  ;;  %2845 = vmatprep.mubr.msk.bf16.mxu1 %vm3237_vm4, %v3236_v1 }
 0x216   : > { %2837 = vmatprep.subr.bf16.mxu1 %v3236_v1 }
 0x217   : > { %1482 = vmatpush1.bf16.msra.mxu0 %v3112_v2 }
 0x218   : > { %2697 = vmatprep.subr.msk.bf16.mxu0 %vm1233_vm1, %v2696_v46 }
 0x219   : > { %2838 = vmatpush3.bf16.msra.mxu1 %v3134_v3 }
 0x21a   : > { %2648 = vmatmul.mubr.msk.bf16.vlgmr.msra.gmra.mxu0 %vm1229_vm3, %v1402_v50  ;;  %2839 = vmatprep.subr.bf16.mxu1 %v3236_v1 }
 0x21b   : > { %1722 = vmatpush1.bf16.msra.mxu0 %v1712_v51  ;;  %1749 = vmatprep.mubr.bf16.mxu0 %v3233_v4  ;;  %v3123_v4 = vld [vmem:[%s3970_s4 + $0x180] ss:$8 sps:$4 sm:$0xff]  }
 0x21c   : > { %1723 = vmatprep.subr.bf16.mxu0 %v3119_v10 }
 0x21d   : > { %2840 = vmatpush3.bf16.msra.mxu1 %v3136_v32  ;;  %v3152_v32 = vld [vmem:[%s3973_s7 + $0x98] sm:$0xff]  }
 0x21e   : > { %2841 = vmatprep.subr.bf16.mxu1 %v3236_v1 }
 0x21f   : > { %1724 = vmatpush1.bf16.msra.mxu0 %v3117_v52 }
 0x220   : > { %1725 = vmatprep.subr.bf16.mxu0 %v3122_v53 }
 0x221   : > { %2842 = vmatpush3.bf16.msra.mxu1 %v3138_v48  ;;  %v3163_v48 = vld [vmem:[%s3975_s9 + $0x8] sm:$0xff]  }
 0x222   : > { %2843 = vmatprep.subr.bf16.mxu1 %v3236_v1 }
 0x223   : > { %1726 = vmatpush1.bf16.msra.mxu0 %v3120_v55  ;;  %v3140_v55 = vld [vmem:[%s3973_s7 + $0x28] sm:$0xff]  }
 0x224   : > { %1727 = vmatprep.subr.bf16.mxu0 %v3125_v56  ;;  %v3141_v56 = vld [vmem:[%s3973_s7 + $0x50] sm:$0xff]  }
 0x225   : > { %2844 = vmatpush3.bf16.msra.mxu1 %v3140_v55 }
 0x226   : > { %2849 = vmatprep.subr.bf16.mxu1 %v3236_v1 }
 0x227   : > { %1728 = vmatpush1.bf16.msra.mxu0 %v3123_v4 }
 0x228   : > { %1729 = vmatprep.subr.bf16.mxu0 %v3128_v57 }
 0x22b   : > { %1730 = vmatpush1.bf16.msra.mxu0 %v3126_v58 }
 0x22c   : > { %1731 = vmatprep.subr.bf16.mxu0 %v3131_v59 }
 0x22f   : > { %1732 = vmatpush1.bf16.msra.mxu0 %v3129_v60 }
 0x230   : > { %2863 = vmatprep.subr.bf16.mxu0 %v3236_v1 }
 0x232   : > { %2698 = vmatmul.mubr.msk.bf16.vlgmr.msra.gmra.mxu0 %vm1229_vm3, %v1652_v62 }
 0x233   : > { %2864 = vmatpush3.bf16.msra.mxu0 %v3133_v0  ;;  %2873 = vmatprep.mubr.msk.bf16.mxu0 %vm3237_vm4, %v3236_v1 }
 0x234   : > { %2865 = vmatprep.subr.bf16.mxu0 %v3236_v1 }
 0x237   : > { %2866 = vmatpush3.bf16.msra.mxu0 %v3135_v6 }
 0x238   : > { %2867 = vmatprep.subr.bf16.mxu0 %v3236_v1 }
 0x23b   : > { %2868 = vmatpush3.bf16.msra.mxu0 %v3137_v34 }
 0x23c   : > { %2869 = vmatprep.subr.bf16.mxu0 %v3236_v1 }
 0x23f   : > { %2870 = vmatpush3.bf16.msra.mxu0 %v3139_v45  ;;  %v3164_v45 = vld [vmem:[%s3975_s9] sm:$0xff]  }
 0x240   : > { %2871 = vmatprep.subr.bf16.mxu0 %v3236_v1 }
 0x243   : > { %2872 = vmatpush3.bf16.msra.mxu0 %v3141_v56 }
 0x244   : > { %2891 = vmatprep.subr.bf16.mxu0 %v3236_v1 }
 0x2bc   : > { %v1380_v9 = vpop.f32.mrf.mxu1 }
 0x2be   : > { %v1382_v12 = vpop.f32.mrf.mxu1 }
 0x2c0   : > { %v1384_v14 = vpop.f32.mrf.mxu1 }
 0x2c2   : > { %v1274_v7 = vpop.f32.mrf.mxu0  ;;  %v1386_v17 = vpop.f32.mrf.mxu1 }
 0x2c3   : > { %v1381_v20 = vadd.f32 %v1380_v9, %v1274_v7 }
 0x2c4   : > { %v1276_v8 = vpop.f32.mrf.mxu0 }
 0x2c5   : > { %v1383_v16 = vadd.f32 %v1382_v12, %v1276_v8 }
 0x2c6   : > { %v1278_v11 = vpop.f32.mrf.mxu0 }
 0x2c7   : > { %v1385_v22 = vadd.f32 %v1384_v14, %v1278_v11 }
 0x2c8   : > { %v1280_v13 = vpop.f32.mrf.mxu0 }
 0x2c9   : > { %v1387_v26 = vadd.f32 %v1386_v17, %v1280_v13  ;;  %v3142_v17 = vld [vmem:[%s3973_s7 + $0x20] sm:$0xff]  }
 0x2d4   : > { %v1627_v19 = vpop.f32.mrf.mxu1 }
 0x2d6   : > { %v1629_v31 = vpop.f32.mrf.mxu1 }
 0x2d8   : > { %v1631_v27 = vpop.f32.mrf.mxu1 }
 0x2da   : > { %v1501_v15 = vpop.f32.mrf.mxu0  ;;  %v1633_v41 = vpop.f32.mrf.mxu1 }
 0x2db   : > { %v1510_v33 = vadd.f32 %v1501_v15, %v1381_v20 }
 0x2dc   : > { %v1503_v18 = vpop.f32.mrf.mxu0 }
 0x2dd   : > { %v1511_v23 = vadd.f32 %v1503_v18, %v1383_v16  ;;  %v1636_v29 = vadd.f32 %v1627_v19, %v1510_v33  ;;  %v3143_v18 = vld [vmem:[%s3973_s7 + $0xc0] sm:$0xff]   ;;  %v3145_v33 = vld [vmem:[%s3973_s7 + $0xb8] sm:$0xff]  }
 0x2de   : > { %v1505_v21 = vpop.f32.mrf.mxu0 }
 0x2df   : > { %v1512_v28 = vadd.f32 %v1505_v21, %v1385_v22  ;;  %v1637_v39 = vadd.f32 %v1629_v31, %v1511_v23  ;;  %v3144_v31 = vld [vmem:[%s3973_s7 + $0x18] sm:$0xff]   ;;  %v3146_v22 = vld [vmem:[%s3973_s7 + $0x10] sm:$0xff]  }
 0x2e0   : > { %v1507_v24 = vpop.f32.mrf.mxu0  ;;  %v3147_v23 = vld [vmem:[%s3973_s7 + $0xb0] sm:$0xff]  }
 0x2e1   : > { %v1513_v35 = vadd.f32 %v1507_v24, %v1387_v26  ;;  %v1638_v5 = vadd.f32 %v1631_v27, %v1512_v28  ;;  %v3149_v26 = vld [vmem:[%s3973_s7 + $0xa8] sm:$0xff]   ;;  %v3150_v28 = vld [vmem:[%s3973_s7] sm:$0xff]  }
 0x2e3   : > { %v1639_v46 = vadd.f32 %v1633_v41, %v1513_v35  ;;  %v3153_v35 = vld [vmem:[%s3973_s7 + $0x90] sm:$0xff]  }
 0x2e4   : > { %v3158_v41 = vld [vmem:[%s3975_s9 + $0x30] sm:$0xff]  }
 0x2f2   : > { %v1751_v36 = vpop.f32.mrf.mxu0 }
 0x2f3   : > { %v1760_v38 = vadd.f32 %v1751_v36, %v1636_v29  ;;  %v3151_v29 = vld [vmem:[%s3973_s7 + $0xa0] sm:$0xff]   ;;  %v3154_v36 = vld [vmem:[%s3973_s7 + $0x88] sm:$0xff]  }
 0x2f4   : > { %v1753_v61 = vpop.f32.mrf.mxu0 }
 0x2f5   : > { %v1776_v42 = vmul.f32 %v1769_v30, %v1760_v38  ;;  %v1761_v43 = vadd.f32 %v1753_v61, %v1637_v39  ;;  %v3156_v38 = vld [vmem:[%s3973_s7 + $0x78] sm:$0xff]  }
 0x2f6   : > { %v1755_v2 = vpop.f32.mrf.mxu0 }
 0x2f7   : > { %v1792_v47 = vadd.f32 %v1785_v37, %v1776_v42  ;;  %v1777_v50 = vmul.f32 %v1773_v40, %v1761_v43  ;;  %v1762_v51 = vadd.f32 %v1755_v2, %v1638_v5  ;;  %v3159_v42 = vld [vmem:[%s3975_s9 + $0x28] sm:$0xff]   ;;  %v3160_v43 = vld [vmem:[%s3975_s9 + $0x20] sm:$0xff]   ;;  %v3162_v5 = vld [vmem:[%s3975_s9 + $0x10] sm:$0xff]  }
 0x2f8   : > { %v1757_v10 = vpop.f32.mrf.mxu0  ;;  %v3165_v2 = vld [vmem:[%s3977_s11 + $0x28] ss:$0 sps:$4 sm:$0x33]  }
 0x2f9   : > { %v1793_v54 = vadd.f32 %v1789_v44, %v1777_v50  ;;  %v1778_v52 = vmul.f32 %v1769_v30, %v1762_v51  ;;  %v1763_v53 = vadd.f32 %v1757_v10, %v1639_v46  ;;  %v1796_v4 = vmax.f32 %v1792_v47, 0.0  ;;  %v3166_v47 = vld [vmem:[%s3977_s11 + $0x20] sm:$0xff]   ;;  %v3167_v50 = vld [vmem:[%s3977_s11 + $0x18] sm:$0xff]   ;;  %v3168_v51 = vld [vmem:[%s3977_s11 + $0x10] sm:$0xff]  }
 0x2fa   : > { %v2420_v46 = vsel %vm1233_vm1, %v3165_v2, 0 }
 0x2fb   : > { %v1797_v57 = vmax.f32 %v1793_v54, 0.0  ;;  %v1794_v58 = vadd.f32 %v1785_v37, %v1778_v52  ;;  %v1779_v59 = vmul.f32 %v1773_v40, %v1763_v53  ;;  %v3155_v37 = vld [vmem:[%s3973_s7 + $0x80] sm:$0xff]   ;;  %v3157_v40 = vld [vmem:[%s3975_s9 + $0x38] ss:$0 sps:$4 sm:$0xff]  }
 0x2fc   : > { %v2327_v61 = vsel %vm2325_vm7, %v3157_v40, 0 }
 0x2fd   : > { %v1795_v60 = vadd.f32 %v1789_v44, %v1779_v59  ;;  %v3006_v62 = vpack.i.bf16 %v1797_v57, %v1796_v4  ;;  %v1798_v63 = vmax.f32 %v1794_v58, 0.0  ;;  %v3161_v44 = vld [vmem:[%s3975_s9 + $0x18] sm:$0xff]  }
 0x2ff   : > { %v1799_v0 = vmax.f32 %v1795_v60, 0.0  ;;  %3007 = vrot.lane.b32.xlu1 %v3006_v62, %s3238_s23 }
 0x301   : > { %v3011_v3 = vpack.i.bf16 %v1799_v0, %v1798_v63 }
 0x303   : > { %3012 = vrot.lane.b32.xlu0 %v3011_v3, %s3238_s23  ;;  %s2785_s23 = sshll.u32 %s3331_s29, 4  ;;  %s3171_s29 = scalar_lea.vmem %s3927_s16, 16 }
 0x304   : > { %s3925_s30 = scalar_lea.hbm %s3979_s13, %s2785_s23  ;;  %p3172_p11 = scmp.ne.s32.totalorder %s3927_s16, %s3171_s29 }
 0x305   : > { %p3179_p1 = scmp.lt.s32.totalorder %s3177_s22, %s3171_s29 }
 0x306   : > { %p3173_p12 = pnand %p3172_p11, %p3348_p5 }
 0x307   : > { %p3180_p2 = por %p3179_p1, %p3178_p0 }
 0x308   : > { %p3174_p13 = pneg %p3173_p12 }
 0x30a   : > { %p3181_p3 = pnand %p3180_p2, %p3174_p13 }
 0x371   : > { %v3008_v6 = vpop.permute.xlu1 %3007 }
 0x372   : > { %v3010_v7 = vunpack.i.h.bf16 %v3008_v6  ;;  %v3009_v8 = vunpack.i.l.bf16 %v3008_v6 }
 0x374   : > { %v1813_v9 = vsel %vm1812_vm5, %v3009_v8, %v3010_v7 }
 0x375   : > { %v1817_v11 = vmax.f32 %v1796_v4, %v1813_v9  ;;  %v3013_v15 = vpop.permute.xlu0 %3012 }
 0x376   : > { %v3015_v21 = vunpack.i.h.bf16 %v3013_v15  ;;  %v3014_v16 = vunpack.i.l.bf16 %v3013_v15 }
 0x377   : > { %v1820_v12 = vrot.slane %v1817_v11, 1 }
 0x378   : > { %v1814_v49 = vsel %vm1812_vm5, %v3014_v16, %v3015_v21  ;;  %v3169_v21 = vld [vmem:[%s3977_s11 + $0x8] sm:$0xff]   ;;  %v3170_v16 = vld [vmem:[%s3977_s11] sm:$0xff]  }
 0x379   : > { %v1822_v13 = vmax.f32 %v1817_v11, %v1820_v12  ;;  %v1818_v24 = vmax.f32 %v1798_v63, %v1814_v49  ;;  %v2256_v12 = vld [vmem:[%s3974_s8] sm:$0x1] }
 0x37b   : > { %v3773_v14 = vpack.c.bf16 %v1822_v13, %v1822_v13  ;;  %v2167_v27 = vrot.slane %v1818_v24, 1 }
 0x37d   : > { %v1846_v19 = vrot.slane %v3773_v14, 1  ;;  %v2005_v20 = vrot.slane %v3773_v14, 2  ;;  %v2169_v30 = vmax.f32 %v1818_v24, %v2167_v27  ;;  %v2091_v39 = vrot.slane %v3773_v14, 3 }
 0x37f   : > { %2846 = vmatmul.mubr.msk.bf16.vlgmr.msra.gmra.mxu1 %vm1877_vm6, %v1846_v19  ;;  %2874 = vmatmul.mubr.msk.bf16.vlgmr.msra.gmra.mxu0 %vm1877_vm6, %v2005_v20  ;;  %v2170_v34 = vpack.c.bf16 %v2169_v30, %v2169_v30 }
 0x380   : > { %2850 = vmatpush3.bf16.msra.mxu1 %v3142_v17  ;;  %2892 = vmatpush3.bf16.msra.mxu0 %v3143_v18 }
 0x381   : > { %2851 = vmatprep.subr.bf16.mxu1 %v3236_v1  ;;  %2893 = vmatprep.subr.bf16.mxu0 %v3236_v1 }
 0x382   : > { %2859 = vmatprep.mubr.msk.bf16.mxu1 %vm3237_vm4, %v3236_v1  ;;  %2901 = vmatprep.mubr.msk.bf16.mxu0 %vm3237_vm4, %v3236_v1 }
 0x384   : > { %2852 = vmatpush3.bf16.msra.mxu1 %v3144_v31  ;;  %2894 = vmatpush3.bf16.msra.mxu0 %v3145_v33  ;;  %v2275_v31 = vld [vmem:[%s3976_s10] sm:$0x1] }
 0x385   : > { %2853 = vmatprep.subr.bf16.mxu1 %v3236_v1  ;;  %2895 = vmatprep.subr.bf16.mxu0 %v3236_v1 }
 0x388   : > { %2854 = vmatpush3.bf16.msra.mxu1 %v3146_v22  ;;  %2896 = vmatpush3.bf16.msra.mxu0 %v3147_v23 }
 0x389   : > { %2855 = vmatprep.subr.bf16.mxu1 %v3236_v1  ;;  %2897 = vmatprep.subr.bf16.mxu0 %v3236_v1 }
 0x38c   : > { %2856 = vmatpush3.bf16.msra.mxu1 %v3148_v25  ;;  %2898 = vmatpush3.bf16.msra.mxu0 %v3149_v26 }
 0x38d   : > { %2857 = vmatprep.subr.bf16.mxu1 %v3236_v1  ;;  %2899 = vmatprep.subr.bf16.mxu0 %v3236_v1 }
 0x390   : > { %2858 = vmatpush3.bf16.msra.mxu1 %v3150_v28  ;;  %2900 = vmatpush3.bf16.msra.mxu0 %v3151_v29 }
 0x391   : > { %2877 = vmatprep.subr.bf16.mxu1 %v3236_v1  ;;  %2925 = vmatprep.subr.bf16.mxu0 %v3236_v1 }
 0x393   : > { %2860 = vmatmul.mubr.msk.bf16.vlgmr.msra.gmra.mxu1 %vm1877_vm6, %v3773_v14  ;;  %2902 = vmatmul.mubr.msk.bf16.vlgmr.msra.gmra.mxu0 %vm1877_vm6, %v2170_v34 }
 0x394   : > { %2878 = vmatpush3.bf16.msra.mxu1 %v3152_v32  ;;  %2887 = vmatprep.mubr.msk.bf16.mxu1 %vm3237_vm4, %v3236_v1 }
 0x395   : > { %2879 = vmatprep.subr.bf16.mxu1 %v3236_v1  ;;  %2937 = vmatprep.mubr.msk.bf16.mxu0 %vm3237_vm4, %v3236_v1 }
 0x396   : > { %2926 = vmatpush3.bf16.msra.mxu0 %v2420_v46 }
 0x397   : > { %2927 = vmatprep.subr.bf16.mxu0 %v3236_v1 }
 0x398   : > { %2880 = vmatpush3.bf16.msra.mxu1 %v3153_v35 }
 0x399   : > { %2881 = vmatprep.subr.bf16.mxu1 %v3236_v1 }
 0x39a   : > { %2928 = vmatpush3.bf16.msra.mxu0 %v3166_v47 }
 0x39b   : > { %2929 = vmatprep.subr.bf16.mxu0 %v3236_v1 }
 0x39c   : > { %2882 = vmatpush3.bf16.msra.mxu1 %v3154_v36 }
 0x39d   : > { %2883 = vmatprep.subr.bf16.mxu1 %v3236_v1 }
 0x39e   : > { %2930 = vmatpush3.bf16.msra.mxu0 %v3167_v50 }
 0x39f   : > { %2931 = vmatprep.subr.bf16.mxu0 %v3236_v1 }
 0x3a0   : > { %2884 = vmatpush3.bf16.msra.mxu1 %v3155_v37 }
 0x3a1   : > { %2885 = vmatprep.subr.bf16.mxu1 %v3236_v1 }
 0x3a2   : > { %2932 = vmatpush3.bf16.msra.mxu0 %v3168_v51 }
 0x3a3   : > { %2933 = vmatprep.subr.bf16.mxu0 %v3236_v1 }
 0x3a4   : > { %2886 = vmatpush3.bf16.msra.mxu1 %v3156_v38 }
 0x3a5   : > { %2905 = vmatprep.subr.bf16.mxu1 %v3236_v1 }
 0x3a6   : > { %2934 = vmatpush3.bf16.msra.mxu0 %v3169_v21 }
 0x3a7   : > { %2888 = vmatmul.mubr.msk.bf16.vlgmr.msra.gmra.mxu1 %vm1877_vm6, %v2091_v39  ;;  %2935 = vmatprep.subr.bf16.mxu0 %v3236_v1 }
 0x3a8   : > { %2921 = vmatprep.mubr.msk.bf16.mxu1 %vm3237_vm4, %v3236_v1  ;;  %2906 = vmatpush3.bf16.msra.mxu1 %v2327_v61 }
 0x3a9   : > { %2907 = vmatprep.subr.bf16.mxu1 %v3236_v1 }
 0x3aa   : > { %2936 = vmatpush3.bf16.msra.mxu0 %v3170_v16 }
 0x3ac   : > { %2908 = vmatpush3.bf16.msra.mxu1 %v3158_v41 }
 0x3ad   : > { %2909 = vmatprep.subr.bf16.mxu1 %v3236_v1 }
 0x3b0   : > { %2910 = vmatpush3.bf16.msra.mxu1 %v3159_v42 }
 0x3b1   : > { %2911 = vmatprep.subr.bf16.mxu1 %v3236_v1 }
 0x3b4   : > { %2912 = vmatpush3.bf16.msra.mxu1 %v3160_v43 }
 0x3b5   : > { %2913 = vmatprep.subr.bf16.mxu1 %v3236_v1 }
 0x3b8   : > { %2914 = vmatpush3.bf16.msra.mxu1 %v3161_v44 }
 0x3b9   : > { %2915 = vmatprep.subr.bf16.mxu1 %v3236_v1 }
 0x3bc   : > { %2916 = vmatpush3.bf16.msra.mxu1 %v3162_v5 }
 0x3bd   : > { %2917 = vmatprep.subr.bf16.mxu1 %v3236_v1 }
 0x3c0   : > { %2918 = vmatpush3.bf16.msra.mxu1 %v3163_v48 }
 0x3c1   : > { %2919 = vmatprep.subr.bf16.mxu1 %v3236_v1  ;;  %v2382_v1 = vld [vmem:[%s3978_s12] sm:$0x1] }
 0x3c4   : > { %2920 = vmatpush3.bf16.msra.mxu1 %v3164_v45 }
 0x43f   : > { %v1915_v10 = vpop.f32.mrf.mxu1  ;;  %v2073_v54 = vpop.f32.mrf.mxu0 }
 0x441   : > { %v2847_v52 = vpop.f32.mrf.mxu1  ;;  %v2875_v53 = vpop.f32.mrf.mxu0 }
 0x443   : > { %v1918_v55 = vpop.f32.mrf.mxu1  ;;  %v2076_v56 = vpop.f32.mrf.mxu0 }
 0x445   : > { %v2848_v4 = vpop.f32.mrf.mxu1  ;;  %v2876_v57 = vpop.f32.mrf.mxu0 }
 0x453   : > { %v1988_v58 = vpop.f32.mrf.mxu1  ;;  %v2249_v59 = vpop.f32.mrf.mxu0 }
 0x454   : > { %v1989_v7 = vadd.f32 %v1988_v58, %v1915_v10 }
 0x455   : > { %v2861_v60 = vpop.f32.mrf.mxu1  ;;  %v2903_v62 = vpop.f32.mrf.mxu0 }
 0x456   : > { %v2079_v8 = vadd.f32 %v2073_v54, %v1989_v7 }
 0x457   : > { %v1991_v63 = vpop.f32.mrf.mxu1  ;;  %v2252_v0 = vpop.f32.mrf.mxu0 }
 0x459   : > { %v2862_v3 = vpop.f32.mrf.mxu1  ;;  %v2904_v6 = vpop.f32.mrf.mxu0 }
 0x467   : > { %v2159_v9 = vpop.f32.mrf.mxu1 }
 0x468   : > { %v2165_v11 = vadd.f32 %v2159_v9, %v2079_v8 }
 0x469   : > { %v2889_v13 = vpop.f32.mrf.mxu1 }
 0x46a   : > { %v2255_v14 = vadd.f32 %v2249_v59, %v2165_v11 }
 0x46b   : > { %v2162_v15 = vpop.f32.mrf.mxu1 }
 0x46c   : > { %v2257_v17 = vadd.f32 %v2256_v12, %v2255_v14 }
 0x46d   : > { %v2890_v18 = vpop.f32.mrf.mxu1 }
 0x46e   : > { %v2258_v19 = vmax.f32 %v2257_v17, 0.0 }
 0x470   : > { %v2259_v20 = vpack.c.bf16 %v2258_v19, %v2258_v19 }
 0x472   : > { %2922 = vmatmul.mubr.msk.bf16.vlgmr.msra.gmra.mxu1 %vm2321_vm8, %v2259_v20 }
 0x532   : > { %v2363_v33 = vpop.f32.mrf.mxu1 }
 0x533   : > { %v2364_v49 = vadd.f32 %v2363_v33, %v2275_v31 }
 0x534   : > { %v2923_v22 = vpop.f32.mrf.mxu1 }
 0x535   : > { %v2369_v23 = vmax.f32 %v2364_v49, 0.0 }
 0x536   : > { %v2366_v24 = vpop.f32.mrf.mxu1 }
 0x537   : > { %v2370_v25 = vpack.c.bf16 %v2369_v23, %v2369_v23 }
 0x538   : > { %v2924_v26 = vpop.f32.mrf.mxu1 }
 0x539   : > { %2938 = vmatmul.mubr.msk.bf16.vlgmr.msra.gmra.mxu0 %vm1229_vm3, %v2370_v25 }
 0x5f9   : > { %v2456_v27 = vpop.f32.mrf.mxu0 }
 0x5fa   : > { %v2457_v28 = vadd.f32 %v2456_v27, %v2382_v1 }
 0x5fb   : > { %v2939_v29 = vpop.f32.mrf.mxu0 }
 0x5fc   : > { %2463 = vst.msk [vmem:[%s432_s27] sm:$0x1] %vm2462_vm9, %v2457_v28 }
 0x5fd   : > { %v2459_v30 = vpop.f32.mrf.mxu0 }
 0x5fe   : > { %3184 = shalt.err (!%p3181_p3)
}
 0x5ff   : > { %s3185_s23 = scalar_lea.hbm %s3925_s30, 16  ;;  %s3189_s14 = scalar_lea.hbm %s3979_s13, 32 }
 0x600   : > { %p3186_p4 = scmp.ne.s32.totalorder %s3925_s30, %s3185_s23  ;;  %p3190_p9 = scmp.lt.s32.totalorder %s3925_s30, %s3979_s13 }
 0x601   : > { %p3191_p10 = scmp.lt.s32.totalorder %s3189_s14, %s3185_s23 }
 0x602   : > { %p3187_p7 = pnand %p3186_p4, %p3348_p5 }
 0x603   : > { %p3192_p11 = por %p3191_p10, %p3190_p9 }
 0x604   : > { %p3188_p8 = pneg %p3187_p7 }
 0x606   : > { %p3193_p12 = pnand %p3192_p11, %p3188_p8 }
 0x608   : > { %3196 = shalt.err (!%p3193_p12)
}
 0x609   : > { %2941 = dma.vmem_to_hbm [thread:$0]  (%p3348_p5), %s3927_s16, 16, %s3925_s30, %s2465_s15   ;;  %v2940_v32 = vpop.f32.mrf.mxu0 }
 0x60a PF: > { %p2947_p13 = scmp.ge.s32.totalorder %s3231_s28, 2  ;;  %s2489_s29 = sand.u32 1, %s3219_s25  }
 0x60b   : > { %s2490_s24 = scalar_lea.sflag [#allocation3], %s2489_s29 }
 0x60c   : > { %p2944_p0 = pnand %p2947_p13, %p3352_p6 }
 0x60e   : > { %p2945_p1 = pneg %p2944_p0 }
 0x610   : > { %3214 = dma.done.wait (%p2945_p1), %s2490_s24, 16  }
 0x611   : > { %3216 = vsyncadd (%p2945_p1), %s2490_s24, 4294967280  ;;  %s3988_s28 = sld [smem:[#allocation6_spill]]  ;;  %s3991_s25 = smov %s3223_s26 }
 0x612   : > { %s3989_s22 = sld [smem:[#allocation5_spill]] }
 0x613   : > { %s3990_s27 = sld [smem:[#allocation7_spill]] }
 0x617   : > { %p23_p2 = scmp.ge.s32.totalorder %s3988_s28, 4  }
 0x618   : > { %s3992_s26 = smov %s3989_s22 }
 0x619   :  { %25 = sbr.rel (!%p23_p2) target bundleno = 3 (0x3), region = 119 }
 0x61e   :  { %2494 = vsyncpa [#allocation3], 1 }
 0x61f   :  { %2496 = vsyncpa [#allocation3 + $0x1], 1 }

</bundles_post_ra>
